<compile_context>
chip_gen: v7x
topology: tpu7x:2x2x1
jax: 0.10.0
libtpu: 0.0.40
codegen_flags: <defaults>
</compile_context>

<pallas_src>
import jax
import jax.numpy as jnp
from jax.experimental import pallas as pl
from jax.experimental.pallas import tpu as pltpu

EMBED_DIM = 300
FEATURE_DIM = 3 * EMBED_DIM      # 900
FEATURE_DIM_PAD = 1024           # 900 padded up to a multiple of 128
FILTER_NUM = 128
KERNEL_SIZE = 3
NUM_CLASSES = 4


def _joint_cnn2_kernel(x_ref, w_ref, b_ref, pooled_ref, y_scratch):
    """One fused conv-as-matmul + bias + ReLU + max-pool.

    x_ref:      (B*S, 1024)  bf16   all feature rows, fetched once
    w_ref:      (1024, 384)  bf16   tap-concatenated conv weights [W0|W1|W2]
    b_ref:      (1, 128)     f32    conv bias
    pooled_ref: (S, 128)     f32    output (max over conv positions)
    y_scratch:  (B*S, 384)   f32    per-row, per-tap partial conv outputs
    """
    S = pooled_ref.shape[0]
    BS = y_scratch.shape[0]
    B = BS // S
    L = B - (KERNEL_SIZE - 1)     # number of conv output positions

    # Single fat MXU matmul: every feat row hits every tap's weights.
    y_scratch[...] = jnp.dot(x_ref[...], w_ref[...],
                             preferred_element_type=jnp.float32)

    bias = b_ref[...]                                       # (1, 128)
    pooled = jnp.full(pooled_ref.shape, -jnp.inf, dtype=jnp.float32)

    # Conv output position l combines tap k applied to batch row (l + k).
    # L is a small, trace-time constant -> static unroll (pure VPU work).
    for l in range(L):
        t0 = y_scratch[pl.ds(l * S, S), pl.ds(0, FILTER_NUM)]
        t1 = y_scratch[pl.ds((l + 1) * S, S), pl.ds(FILTER_NUM, FILTER_NUM)]
        t2 = y_scratch[pl.ds((l + 2) * S, S), pl.ds(2 * FILTER_NUM, FILTER_NUM)]
        conv_l = jnp.maximum(t0 + t1 + t2 + bias, 0.0)       # bias + ReLU
        pooled = jnp.maximum(pooled, conv_l)                 # running max-pool

    pooled_ref[...] = pooled


def joint_cnn2_pallas(texts, entity_1, entity_2, params):
    # ---- glue: embedding gathers + concat (plain JAX; gather is not
    #      tile-friendly on TPU and XLA handles it fine) ----
    word_embs = params["word_emb"][texts]     # (B, S, 300)
    pos1_embs = params["pos1_emb"][entity_1]  # (B, S, 300)
    pos2_embs = params["pos2_emb"][entity_2]  # (B, S, 300)
    feat = jnp.concatenate([word_embs, pos1_embs, pos2_embs], axis=2)  # (B,S,900)

    B, S, F = feat.shape
    L = B - (KERNEL_SIZE - 1)     # conv output length (conv runs over batch dim)
    assert L >= 1, "batch must be >= kernel_size (3)"

    # Flatten to (B*S, 900), zero-pad K to 1024, cast to bf16 (MXU-native).
    x = feat.reshape(B * S, F)
    x = jnp.pad(x, ((0, 0), (0, FEATURE_DIM_PAD - F))).astype(jnp.bfloat16)

    # conv_w: (128, 900, 3) torch layout -> per-tap (900, 128), concatenated
    # along N -> (900, 384) -> pad K -> (1024, 384), bf16.
    w_taps = jnp.transpose(params["conv_w"], (2, 1, 0))      # (3, 900, 128)
    w_all = jnp.concatenate([w_taps[0], w_taps[1], w_taps[2]], axis=1)  # (900,384)
    w_all = jnp.pad(w_all, ((0, FEATURE_DIM_PAD - F), (0, 0))).astype(jnp.bfloat16)

    b_conv = params["conv_b"].reshape(1, FILTER_NUM).astype(jnp.float32)

    pooled = pl.pallas_call(
        _joint_cnn2_kernel,
        grid=(1,),
        in_specs=[
            pl.BlockSpec((B * S, FEATURE_DIM_PAD), lambda i: (0, 0)),
            pl.BlockSpec((FEATURE_DIM_PAD, KERNEL_SIZE * FILTER_NUM),
                         lambda i: (0, 0)),
            pl.BlockSpec((1, FILTER_NUM), lambda i: (0, 0)),
        ],
        out_specs=pl.BlockSpec((S, FILTER_NUM), lambda i: (0, 0)),
        out_shape=jax.ShapeDtypeStruct((S, FILTER_NUM), jnp.float32),
        scratch_shapes=[
            pltpu.VMEM((B * S, KERNEL_SIZE * FILTER_NUM), jnp.float32)],
        compiler_params=pltpu.CompilerParams(
            dimension_semantics=("arbitrary",)),
    )(x, w_all, b_conv)

    # Tiny FC (128 -> 4) + bias in plain JAX: keeps the kernel output
    # lane-dense (unmasked 128-lane stores) and costs XLA essentially nothing.
    logits = pooled @ params["fc_w"].T.astype(jnp.float32) + params["fc_b"]
    return logits


def joint_cnn2_reference(texts, entity_1, entity_2, params):
    """Pure-JAX f32 reference mirroring the PyTorch forward exactly."""
    word_embs = params["word_emb"][texts]
    pos1_embs = params["pos1_emb"][entity_1]
    pos2_embs = params["pos2_emb"][entity_2]
    feat = jnp.concatenate([word_embs, pos1_embs, pos2_embs], axis=2)  # (B,S,900)
    x = jnp.transpose(feat, (1, 2, 0))                                 # (S,900,B)
    conv = jax.lax.conv_general_dilated(
        x, params["conv_w"], window_strides=(1,), padding="VALID",
        dimension_numbers=("NCH", "OIH", "NCH"))                       # (S,128,B-2)
    conv = jax.nn.relu(conv + params["conv_b"][None, :, None])
    conv = jnp.transpose(conv, (0, 2, 1))                              # (S,B-2,128)
    pooled = jnp.max(conv, axis=1)                                     # (S,128)
    return pooled @ params["fc_w"].T + params["fc_b"]                  # (S,4)


def init_params(vocab_size, key):
    ks = jax.random.split(key, 6)
    scale = 0.1
    return {
        "word_emb": scale * jax.random.normal(ks[0], (vocab_size, EMBED_DIM), jnp.float32),
        "pos1_emb": scale * jax.random.normal(ks[1], (vocab_size, EMBED_DIM), jnp.float32),
        "pos2_emb": scale * jax.random.normal(ks[2], (vocab_size, EMBED_DIM), jnp.float32),
        "conv_w": scale * jax.random.normal(ks[3], (FILTER_NUM, FEATURE_DIM, KERNEL_SIZE), jnp.float32),
        "conv_b": scale * jax.random.normal(ks[4], (FILTER_NUM,), jnp.float32),
        "fc_w": scale * jax.random.normal(ks[5], (NUM_CLASSES, FILTER_NUM), jnp.float32),
        "fc_b": jnp.zeros((NUM_CLASSES,), jnp.float32),
    }


if __name__ == "__main__":
    key = jax.random.PRNGKey(0)
    vocab_size = 50
    B, S = 8, 16   # batch, sentence_length (conv length dim is B, so B >= 3)

    k_p, k_t, k_e1, k_e2 = jax.random.split(key, 4)
    params = init_params(vocab_size, k_p)
    texts = jax.random.randint(k_t, (B, S), 0, vocab_size, dtype=jnp.int32)
    entity_1 = jax.random.randint(k_e1, (B, S), 0, vocab_size, dtype=jnp.int32)
    entity_2 = jax.random.randint(k_e2, (B, S), 0, vocab_size, dtype=jnp.int32)

    logits = joint_cnn2_pallas(texts, entity_1, entity_2, params)
    logits = jax.block_until_ready(logits)

    ref = joint_cnn2_reference(texts, entity_1, entity_2, params)
    assert logits.shape == (S, NUM_CLASSES)
    # bf16 matmul operands (f32 accumulation) -> looser tolerance than pure f32.
    assert jnp.allclose(logits, ref, atol=1e-2, rtol=1e-2), (
        "mismatch vs reference")

    print("KERNEL_OK")
</pallas_src>

<mosaic_0001>
module attributes {stable_mosaic.version = 11 : i64} {
  func.func @_joint_cnn2_kernel(%arg0: i32, %arg1: memref<128x1024xbf16, #tpu.memory_space<vmem>>, %arg2: memref<1024x384xbf16, #tpu.memory_space<vmem>>, %arg3: memref<1x128xf32, #tpu.memory_space<vmem>>, %arg4: memref<16x128xf32, #tpu.memory_space<vmem>>, %arg5: memref<128x384xf32, #tpu.memory_space<vmem>>) attributes {dimension_semantics = [#tpu.dimension_semantics<arbitrary>], iteration_bounds = array<i64: 1>, scalar_prefetch = 0 : i64, scratch_operands = 1 : i64, tpu.core_type = #tpu.core_type<tc>, window_params = [{pipeline_mode = #tpu.pipeline_mode<synchronous>, transform_indices = @transform_0, window_bounds = array<i64: 128, 1024>}, {pipeline_mode = #tpu.pipeline_mode<synchronous>, transform_indices = @transform_1, window_bounds = array<i64: 1024, 384>}, {pipeline_mode = #tpu.pipeline_mode<synchronous>, transform_indices = @transform_2, window_bounds = array<i64: 1, 128>}, {pipeline_mode = #tpu.pipeline_mode<synchronous>, transform_indices = @transform_3, window_bounds = array<i64: 16, 128>}]} {
    %c0 = arith.constant 0 : index
    %c0_0 = arith.constant 0 : index
    %0 = vector.load %arg1[%c0, %c0_0] : memref<128x1024xbf16, #tpu.memory_space<vmem>>, vector<128x1024xbf16>
    %c0_1 = arith.constant 0 : index
    %c0_2 = arith.constant 0 : index
    %1 = vector.load %arg2[%c0_1, %c0_2] : memref<1024x384xbf16, #tpu.memory_space<vmem>>, vector<1024x384xbf16>
    %cst = arith.constant dense<0.000000e+00> : vector<128x384xf32>
    %2 = tpu.matmul %0, %1, %cst {dimension_numbers = #tpu.dot_dimension_numbers<[1], [0], [0], [1], [0, 0, 1, 1], [], []>} : vector<128x1024xbf16>, vector<1024x384xbf16>, vector<128x384xf32> -> vector<128x384xf32>
    %c0_3 = arith.constant 0 : index
    %c0_4 = arith.constant 0 : index
    %3 = vector.load %arg5[%c0_3, %c0_4] : memref<128x384xf32, #tpu.memory_space<vmem>>, vector<128x384xf32>
    tpu.vector_store %arg5[%c0_3, %c0_4], %2 {strides = array<i32>} : memref<128x384xf32, #tpu.memory_space<vmem>>, vector<128x384xf32>,
    %c0_5 = arith.constant 0 : index
    %c0_6 = arith.constant 0 : index
    %4 = vector.load %arg3[%c0_5, %c0_6] : memref<1x128xf32, #tpu.memory_space<vmem>>, vector<1x128xf32>
    %cst_7 = arith.constant 0xFF800000 : f32
    %5 = vector.broadcast %cst_7 : f32 to vector<16x128xf32>
    %c0_8 = arith.constant 0 : index
    %c0_9 = arith.constant 0 : index
    %6 = vector.load %arg5[%c0_8, %c0_9] : memref<128x384xf32, #tpu.memory_space<vmem>>, vector<16x128xf32>
    %c16 = arith.constant 16 : index
    %c128 = arith.constant 128 : index
    %7 = vector.load %arg5[%c16, %c128] : memref<128x384xf32, #tpu.memory_space<vmem>>, vector<16x128xf32>
    %c32 = arith.constant 32 : index
    %c256 = arith.constant 256 : index
    %8 = vector.load %arg5[%c32, %c256] : memref<128x384xf32, #tpu.memory_space<vmem>>, vector<16x128xf32>
    %9 = arith.addf %6, %7 : vector<16x128xf32>
    %10 = arith.addf %9, %8 : vector<16x128xf32>
    %11 = vector.broadcast %4 : vector<1x128xf32> to vector<16x128xf32>
    %12 = arith.addf %10, %11 : vector<16x128xf32>
    %cst_10 = arith.constant 0.000000e+00 : f32
    %13 = vector.broadcast %cst_10 : f32 to vector<16x128xf32>
    %14 = arith.maximumf %12, %13 : vector<16x128xf32>
    %15 = arith.maximumf %5, %14 : vector<16x128xf32>
    %c16_11 = arith.constant 16 : index
    %c0_12 = arith.constant 0 : index
    %16 = vector.load %arg5[%c16_11, %c0_12] : memref<128x384xf32, #tpu.memory_space<vmem>>, vector<16x128xf32>
    %c32_13 = arith.constant 32 : index
    %c128_14 = arith.constant 128 : index
    %17 = vector.load %arg5[%c32_13, %c128_14] : memref<128x384xf32, #tpu.memory_space<vmem>>, vector<16x128xf32>
    %c48 = arith.constant 48 : index
    %c256_15 = arith.constant 256 : index
    %18 = vector.load %arg5[%c48, %c256_15] : memref<128x384xf32, #tpu.memory_space<vmem>>, vector<16x128xf32>
    %19 = arith.addf %16, %17 : vector<16x128xf32>
    %20 = arith.addf %19, %18 : vector<16x128xf32>
    %21 = vector.broadcast %4 : vector<1x128xf32> to vector<16x128xf32>
    %22 = arith.addf %20, %21 : vector<16x128xf32>
    %cst_16 = arith.constant 0.000000e+00 : f32
    %23 = vector.broadcast %cst_16 : f32 to vector<16x128xf32>
    %24 = arith.maximumf %22, %23 : vector<16x128xf32>
    %25 = arith.maximumf %15, %24 : vector<16x128xf32>
    %c32_17 = arith.constant 32 : index
    %c0_18 = arith.constant 0 : index
    %26 = vector.load %arg5[%c32_17, %c0_18] : memref<128x384xf32, #tpu.memory_space<vmem>>, vector<16x128xf32>
    %c48_19 = arith.constant 48 : index
    %c128_20 = arith.constant 128 : index
    %27 = vector.load %arg5[%c48_19, %c128_20] : memref<128x384xf32, #tpu.memory_space<vmem>>, vector<16x128xf32>
    %c64 = arith.constant 64 : index
    %c256_21 = arith.constant 256 : index
    %28 = vector.load %arg5[%c64, %c256_21] : memref<128x384xf32, #tpu.memory_space<vmem>>, vector<16x128xf32>
    %29 = arith.addf %26, %27 : vector<16x128xf32>
    %30 = arith.addf %29, %28 : vector<16x128xf32>
    %31 = vector.broadcast %4 : vector<1x128xf32> to vector<16x128xf32>
    %32 = arith.addf %30, %31 : vector<16x128xf32>
    %cst_22 = arith.constant 0.000000e+00 : f32
    %33 = vector.broadcast %cst_22 : f32 to vector<16x128xf32>
    %34 = arith.maximumf %32, %33 : vector<16x128xf32>
    %35 = arith.maximumf %25, %34 : vector<16x128xf32>
    %c48_23 = arith.constant 48 : index
    %c0_24 = arith.constant 0 : index
    %36 = vector.load %arg5[%c48_23, %c0_24] : memref<128x384xf32, #tpu.memory_space<vmem>>, vector<16x128xf32>
    %c64_25 = arith.constant 64 : index
    %c128_26 = arith.constant 128 : index
    %37 = vector.load %arg5[%c64_25, %c128_26] : memref<128x384xf32, #tpu.memory_space<vmem>>, vector<16x128xf32>
    %c80 = arith.constant 80 : index
    %c256_27 = arith.constant 256 : index
    %38 = vector.load %arg5[%c80, %c256_27] : memref<128x384xf32, #tpu.memory_space<vmem>>, vector<16x128xf32>
    %39 = arith.addf %36, %37 : vector<16x128xf32>
    %40 = arith.addf %39, %38 : vector<16x128xf32>
    %41 = vector.broadcast %4 : vector<1x128xf32> to vector<16x128xf32>
    %42 = arith.addf %40, %41 : vector<16x128xf32>
    %cst_28 = arith.constant 0.000000e+00 : f32
    %43 = vector.broadcast %cst_28 : f32 to vector<16x128xf32>
    %44 = arith.maximumf %42, %43 : vector<16x128xf32>
    %45 = arith.maximumf %35, %44 : vector<16x128xf32>
    %c64_29 = arith.constant 64 : index
    %c0_30 = arith.constant 0 : index
    %46 = vector.load %arg5[%c64_29, %c0_30] : memref<128x384xf32, #tpu.memory_space<vmem>>, vector<16x128xf32>
    %c80_31 = arith.constant 80 : index
    %c128_32 = arith.constant 128 : index
    %47 = vector.load %arg5[%c80_31, %c128_32] : memref<128x384xf32, #tpu.memory_space<vmem>>, vector<16x128xf32>
    %c96 = arith.constant 96 : index
    %c256_33 = arith.constant 256 : index
    %48 = vector.load %arg5[%c96, %c256_33] : memref<128x384xf32, #tpu.memory_space<vmem>>, vector<16x128xf32>
    %49 = arith.addf %46, %47 : vector<16x128xf32>
    %50 = arith.addf %49, %48 : vector<16x128xf32>
    %51 = vector.broadcast %4 : vector<1x128xf32> to vector<16x128xf32>
    %52 = arith.addf %50, %51 : vector<16x128xf32>
    %cst_34 = arith.constant 0.000000e+00 : f32
    %53 = vector.broadcast %cst_34 : f32 to vector<16x128xf32>
    %54 = arith.maximumf %52, %53 : vector<16x128xf32>
    %55 = arith.maximumf %45, %54 : vector<16x128xf32>
    %c80_35 = arith.constant 80 : index
    %c0_36 = arith.constant 0 : index
    %56 = vector.load %arg5[%c80_35, %c0_36] : memref<128x384xf32, #tpu.memory_space<vmem>>, vector<16x128xf32>
    %c96_37 = arith.constant 96 : index
    %c128_38 = arith.constant 128 : index
    %57 = vector.load %arg5[%c96_37, %c128_38] : memref<128x384xf32, #tpu.memory_space<vmem>>, vector<16x128xf32>
    %c112 = arith.constant 112 : index
    %c256_39 = arith.constant 256 : index
    %58 = vector.load %arg5[%c112, %c256_39] : memref<128x384xf32, #tpu.memory_space<vmem>>, vector<16x128xf32>
    %59 = arith.addf %56, %57 : vector<16x128xf32>
    %60 = arith.addf %59, %58 : vector<16x128xf32>
    %61 = vector.broadcast %4 : vector<1x128xf32> to vector<16x128xf32>
    %62 = arith.addf %60, %61 : vector<16x128xf32>
    %cst_40 = arith.constant 0.000000e+00 : f32
    %63 = vector.broadcast %cst_40 : f32 to vector<16x128xf32>
    %64 = arith.maximumf %62, %63 : vector<16x128xf32>
    %65 = arith.maximumf %55, %64 : vector<16x128xf32>
    %c0_41 = arith.constant 0 : index
    %c0_42 = arith.constant 0 : index
    %66 = vector.load %arg4[%c0_41, %c0_42] : memref<16x128xf32, #tpu.memory_space<vmem>>, vector<16x128xf32>
    tpu.vector_store %arg4[%c0_41, %c0_42], %65 {strides = array<i32>} : memref<16x128xf32, #tpu.memory_space<vmem>>, vector<16x128xf32>,
    return
  }
  func.func @transform_0(%arg0: i32) -> (i32, i32) {
    %c0_i32 = arith.constant 0 : i32
    %c0_i32_0 = arith.constant 0 : i32
    %c0_i32_1 = arith.constant 0 : i32
    return %c0_i32, %c0_i32_0 : i32, i32
  }
  func.func @transform_1(%arg0: i32) -> (i32, i32) {
    %c0_i32 = arith.constant 0 : i32
    %c0_i32_0 = arith.constant 0 : i32
    %c0_i32_1 = arith.constant 0 : i32
    return %c0_i32, %c0_i32_0 : i32, i32
  }
  func.func @transform_2(%arg0: i32) -> (i32, i32) {
    %c0_i32 = arith.constant 0 : i32
    %c0_i32_0 = arith.constant 0 : i32
    %c0_i32_1 = arith.constant 0 : i32
    return %c0_i32, %c0_i32_0 : i32, i32
  }
  func.func @transform_3(%arg0: i32) -> (i32, i32) {
    %c0_i32 = arith.constant 0 : i32
    %c0_i32_0 = arith.constant 0 : i32
    %c0_i32_1 = arith.constant 0 : i32
    return %c0_i32, %c0_i32_0 : i32, i32
  }
}

</mosaic_0001>

<bundles_post_ra>
// kernel: tpu_custom_call.1
= control target key start
LH: loop header
LB: loop body
LE: loop exit
PB: predicated region body
PF: predicated region fallthrough
CT: control target
= control target key end

     0   :  { %8 = vsyncpa [#allocation4], 0  ;;  %s4000_s0 = inlined_call_operand.hbm [shape: bf16[128,1024], index: 0, kind: input, shape index: {}]   ;;  %s4001_s1 = inlined_call_operand.hbm [shape: bf16[1024,384], index: 1, kind: input, shape index: {}]   ;;  %s4002_s2 = inlined_call_operand.vmem [shape: f32[1,128], index: 2, kind: input, shape index: {}]   ;;  %s4003_s3 = inlined_call_operand.hbm [shape: f32[16,128], index: 3, kind: output, shape index: {}]  }
   0x1   :  { %9 = vsyncpa [#allocation7], 0 }
   0x2   :  { %10 = vsyncpa [#allocation5], 0  ;;  %s3651_s12 = smov [#allocation3]   ;;  %s3579_s16 = scalar_lea.hbm %s4000_s0, 8192 }
   0x3   :  { %s16_s13 = sshll.u32 %s3651_s12, 4  ;;  %p3580_p0 = scmp.ne.s32.totalorder %s4000_s0, %s3579_s16  ;;  %s17_s13 = int_to_ptr.vmem [resolvable:$true] %s16_s13 }
   0x4   :  { %p3583_p1 = scmp.lt.u32.totalorder %s3579_s16, %s4000_s0 }
   0x6   :  { %p3585_p2 = pnand %p3583_p1, %p3580_p0 }
   0x8   :  { %3588 = shalt.err (!%p3585_p2)
}
   0x9   :  { %s3589_s21 = scalar_lea.vmem %s17_s13, 8192  ;;  %p3594_p4 = scmp.lt.s32.totalorder %s17_s13, %s17_s13 }
   0xa   :  { %p3590_p3 = scmp.ne.s32.totalorder %s17_s13, %s3589_s21  ;;  %p3595_p5 = scmp.lt.s32.totalorder %s3589_s21, %s3589_s21 }
   0xc   :  { %p3596_p6 = por %p3595_p5, %p3594_p4 }
   0xe   :  { %p3597_p7 = pnand %p3596_p6, %p3590_p3 }
  0x10   :  { %3600 = shalt.err (!%p3597_p7)
}
  0x11   :  { %s3652_s22 = smov 512   ;;  %s3653_s23 = smov 32  }
  0x12   :  { %22 = dma.hbm_to_vmem [thread:$0]  %s4000_s0, 8192, %s17_s13, [#allocation4], %s3652_s22, %s3652_s22, %s3653_s23  }
  0x13   :  { %s3654_s26 = smov [#allocation6]   ;;  %s3601_s30 = scalar_lea.hbm %s4001_s1, 24576 }
  0x14   :  { %s28_s27 = sshll.u32 %s3654_s26, 4  ;;  %p3602_p8 = scmp.ne.s32.totalorder %s4001_s1, %s3601_s30  ;;  %s29_s27 = int_to_ptr.vmem [resolvable:$true] %s28_s27 }
  0x15   :  { %p3605_p9 = scmp.lt.u32.totalorder %s3601_s30, %s4001_s1 }
  0x17   :  { %p3607_p10 = pnand %p3605_p9, %p3602_p8 }
  0x19   :  { %3610 = shalt.err (!%p3607_p10)
}
  0x1a   :  { %s3611_s8 = scalar_lea.vmem %s29_s27, 24576  ;;  %p3616_p12 = scmp.lt.s32.totalorder %s29_s27, %s29_s27 }
  0x1b   :  { %p3612_p11 = scmp.ne.s32.totalorder %s29_s27, %s3611_s8  ;;  %p3617_p13 = scmp.lt.s32.totalorder %s3611_s8, %s3611_s8 }
  0x1d   :  { %p3618_p0 = por %p3617_p13, %p3616_p12 }
  0x1f   :  { %p3619_p1 = pnand %p3618_p0, %p3612_p11 }
  0x21   :  { %3622 = shalt.err (!%p3619_p1)
}
  0x22   :  { %s3655_s0 = smov 192   ;;  %s3656_s9 = smov 12  }
  0x23   :  { %34 = dma.hbm_to_vmem [thread:$0]  %s4001_s1, 24576, %s29_s27, [#allocation7], %s3655_s0, %s3655_s0, %s3656_s9  }
  0x24   :  { %3645 = dma.done.wait [#allocation4], 8192  }
  0x25   :  { %3646 = vsyncadd [#allocation4], 4294959104 }
  0x26   :  { %3647 = dma.done.wait [#allocation7], 24576  }
  0x27   :  { %3648 = vsyncadd [#allocation7], 4294942720  ;;  %v3323_v0 = vld [vmem:[#allocation6 + $0x4] ss:$12 sps:$4 sm:$0xff]   ;;  %v3325_v1 = vld [vmem:[#allocation6 + $0xc8] ss:$12 sps:$4 sm:$0xff]  }
  0x28   :  { %1708 = vmatprep.subr.bf16.mxu0 %v3323_v0  ;;  %v3326_v2 = vld [vmem:[#allocation6] ss:$12 sps:$4 sm:$0xff]   ;;  %2974 = vmatprep.subr.bf16.mxu1 %v3325_v1  ;;  %v3327_v3 = vld [vmem:[#allocation6 + $0x8] ss:$12 sps:$4 sm:$0xff]   ;;  %v3331_v6 = vld [vmem:[#allocation6 + $0x18] ss:$12 sps:$4 sm:$0xff]  }
  0x29   :  { %1709 = vmatpush1.bf16.msra.mxu0 %v3326_v2  ;;  %v3328_v4 = vld [vmem:[#allocation6 + $0x1c] ss:$12 sps:$4 sm:$0xff]   ;;  %2975 = vmatpush3.bf16.msra.mxu1 %v3327_v3  ;;  %v3330_v5 = vld [vmem:[#allocation6 + $0xe0] ss:$12 sps:$4 sm:$0xff]   ;;  %v3335_v9 = vld [vmem:[#allocation6 + $0xf8] ss:$12 sps:$4 sm:$0xff]  }
  0x2a   :  { %1710 = vmatprep.subr.bf16.mxu0 %v3328_v4  ;;  %v3332_v7 = vld [vmem:[#allocation6 + $0x20] ss:$12 sps:$4 sm:$0xff]   ;;  %2976 = vmatprep.subr.bf16.mxu1 %v3330_v5  ;;  %v3336_v10 = vld [vmem:[#allocation6 + $0x30] ss:$12 sps:$4 sm:$0xff]   ;;  %v3337_v11 = vld [vmem:[#allocation6 + $0x38] ss:$12 sps:$4 sm:$0xff]  }
  0x2b   :  { %v3333_v8 = vld [vmem:[#allocation6 + $0x34] ss:$12 sps:$4 sm:$0xff]   ;;  %v3338_v12 = vld [vmem:[#allocation6 + $0x4c] ss:$12 sps:$4 sm:$0xff]   ;;  %v3340_v13 = vld [vmem:[#allocation6 + $0x110] ss:$12 sps:$4 sm:$0xff]  }
  0x2c   :  { %v3341_v14 = vld [vmem:[#allocation6 + $0x48] ss:$12 sps:$4 sm:$0xff]   ;;  %v3342_v15 = vld [vmem:[#allocation6 + $0x50] ss:$12 sps:$4 sm:$0xff]   ;;  %v3346_v18 = vld [vmem:[#allocation6 + $0x60] ss:$12 sps:$4 sm:$0xff]  }
  0x2d   :  { %1711 = vmatpush1.bf16.msra.mxu0 %v3331_v6  ;;  %2977 = vmatpush3.bf16.msra.mxu1 %v3332_v7  ;;  %v3343_v16 = vld [vmem:[#allocation6 + $0x64] ss:$12 sps:$4 sm:$0xff]   ;;  %v3345_v17 = vld [vmem:[#allocation6 + $0x128] ss:$12 sps:$4 sm:$0xff]   ;;  %v3350_v21 = vld [vmem:[#allocation6 + $0x140] ss:$12 sps:$4 sm:$0xff]  }
  0x2e   :  { %1712 = vmatprep.subr.bf16.mxu0 %v3333_v8  ;;  %2978 = vmatprep.subr.bf16.mxu1 %v3335_v9  ;;  %v3347_v19 = vld [vmem:[#allocation6 + $0x68] ss:$12 sps:$4 sm:$0xff]   ;;  %v3351_v22 = vld [vmem:[#allocation6 + $0x78] ss:$12 sps:$4 sm:$0xff]   ;;  %v3352_v23 = vld [vmem:[#allocation6 + $0x80] ss:$12 sps:$4 sm:$0xff]  }
  0x2f   :  { %v3348_v20 = vld [vmem:[#allocation6 + $0x7c] ss:$12 sps:$4 sm:$0xff]   ;;  %v3353_v24 = vld [vmem:[#allocation6 + $0x94] ss:$12 sps:$4 sm:$0xff]   ;;  %v3355_v25 = vld [vmem:[#allocation6 + $0x158] ss:$12 sps:$4 sm:$0xff]  }
  0x30   :  { %v3356_v26 = vld [vmem:[#allocation6 + $0x90] ss:$12 sps:$4 sm:$0xff]   ;;  %v3357_v27 = vld [vmem:[#allocation6 + $0x98] ss:$12 sps:$4 sm:$0xff]   ;;  %v3361_v32 = vld [vmem:[#allocation6 + $0xa8] ss:$12 sps:$4 sm:$0xff]  }
  0x31   :  { %1713 = vmatpush1.bf16.msra.mxu0 %v3336_v10  ;;  %2979 = vmatpush3.bf16.msra.mxu1 %v3337_v11  ;;  %v3358_v28 = vld [vmem:[#allocation6 + $0xac] ss:$12 sps:$4 sm:$0xff]   ;;  %v3360_v29 = vld [vmem:[#allocation6 + $0x170] ss:$12 sps:$4 sm:$0xff]   ;;  %v44_v30 = vld [vmem:[#allocation3] sm:$0xff] }
  0x32   :  { %1714 = vmatprep.subr.bf16.mxu0 %v3338_v12  ;;  %2980 = vmatprep.subr.bf16.mxu1 %v3340_v13  ;;  %v48_v31 = vld [vmem:[#allocation3 + $0x20] sm:$0xff]  ;;  %v3362_v34 = vld [vmem:[#allocation6 + $0xb0] ss:$12 sps:$4 sm:$0xff]   ;;  %v3381_v45 = vld [vmem:[#allocation6 + $0x248] ss:$12 sps:$4 sm:$0xff]  }
  0x33   :  { %v2718_v33 = vcombine.high %v44_v30, %v48_v31  ;;  %v3363_v35 = vld [vmem:[#allocation6 + $0xc4] ss:$12 sps:$4 sm:$0xff]   ;;  %v3704_v38 = vcombine.low %v44_v30, %v48_v31  ;;  %v3365_v39 = vld [vmem:[#allocation6 + $0xc0] ss:$12 sps:$4 sm:$0xff]   ;;  %v3366_v40 = vld [vmem:[#allocation6 + $0xdc] ss:$12 sps:$4 sm:$0xff]  }
  0x34   :  { %v52_v36 = vld [vmem:[#allocation3 + $0x40] sm:$0xff]  ;;  %v3382_v47 = vld [vmem:[#allocation6 + $0x188] ss:$12 sps:$4 sm:$0xff]   ;;  %v3371_v49 = vld [vmem:[#allocation6 + $0xf0] ss:$12 sps:$4 sm:$0xff]  }
  0x35   :  { %1715 = vmatpush1.bf16.msra.mxu0 %v3341_v14  ;;  %2981 = vmatpush3.bf16.msra.mxu1 %v3342_v15  ;;  %v56_v37 = vld [vmem:[#allocation3 + $0x60] sm:$0xff]  ;;  %v3372_v50 = vld [vmem:[#allocation6 + $0x10c] ss:$12 sps:$4 sm:$0xff]   ;;  %v3374_v53 = vld [vmem:[#allocation6 + $0x108] ss:$12 sps:$4 sm:$0xff]  }
  0x36   :  { %1716 = vmatprep.subr.bf16.mxu0 %v3343_v16  ;;  %2982 = vmatprep.subr.bf16.mxu1 %v3345_v17  ;;  %v3706_v41 = vcombine.high %v52_v36, %v56_v37  ;;  %v3368_v42 = vld [vmem:[#allocation6 + $0xd8] ss:$12 sps:$4 sm:$0xff]   ;;  %v3369_v43 = vld [vmem:[#allocation6 + $0xf4] ss:$12 sps:$4 sm:$0xff]   ;;  %v3710_v48 = vcombine.low %v52_v36, %v56_v37  ;;  %v3378_v60 = vld [vmem:[#allocation6 + $0x13c] ss:$12 sps:$4 sm:$0xff]  }
  0x37   :  { %2192 = vmatprep.mubr.bf16.mxu1 %v2718_v33  ;;  %1740 = vmatprep.mubr.bf16.mxu0 %v2718_v33  ;;  %v60_v44 = vld [vmem:[#allocation3 + $0x80] sm:$0xff]  ;;  %v3405_v3 = vld [vmem:[#allocation6 + $0x290] ss:$12 sps:$4 sm:$0xff]   ;;  %v3386_v8 = vld [vmem:[#allocation6 + $0x16c] ss:$12 sps:$4 sm:$0xff]  }
  0x38   :  { %v64_v46 = vld [vmem:[#allocation3 + $0xa0] sm:$0xff]  ;;  %v3406_v5 = vld [vmem:[#allocation6 + $0x1d0] ss:$12 sps:$4 sm:$0xff]   ;;  %v3410_v10 = vld [vmem:[#allocation6 + $0x2a8] ss:$12 sps:$4 sm:$0xff]  }
  0x39   :  { %1717 = vmatpush1.bf16.msra.mxu0 %v3346_v18  ;;  %2983 = vmatpush3.bf16.msra.mxu1 %v3347_v19  ;;  %v3712_v51 = vcombine.high %v60_v44, %v64_v46  ;;  %v3389_v52 = vld [vmem:[#allocation6 + $0x260] ss:$12 sps:$4 sm:$0xff]   ;;  %v3375_v55 = vld [vmem:[#allocation6 + $0x124] ss:$12 sps:$4 sm:$0xff]   ;;  %v3716_v58 = vcombine.low %v60_v44, %v64_v46  ;;  %v3411_v11 = vld [vmem:[#allocation6 + $0x1e8] ss:$12 sps:$4 sm:$0xff]  }
  0x3a   :  { %1718 = vmatprep.subr.bf16.mxu0 %v3348_v20  ;;  %2984 = vmatprep.subr.bf16.mxu1 %v3350_v21  ;;  %v3390_v54 = vld [vmem:[#allocation6 + $0x1a0] ss:$12 sps:$4 sm:$0xff]   ;;  %v3397_v61 = vld [vmem:[#allocation6 + $0x278] ss:$12 sps:$4 sm:$0xff]   ;;  %v3385_v7 = vld [vmem:[#allocation6 + $0x150] ss:$12 sps:$4 sm:$0xff]  }
  0x3b   :  { %v68_v56 = vld [vmem:[#allocation3 + $0xc0] sm:$0xff]  ;;  %v3388_v12 = vld [vmem:[#allocation6 + $0x168] ss:$12 sps:$4 sm:$0xff]   ;;  %v3399_v30 = vld [vmem:[#allocation6 + $0x1b0] ss:$12 sps:$4 sm:$0xff]  }
  0x3c   :  { %v72_v57 = vld [vmem:[#allocation3 + $0xe0] sm:$0xff]  ;;  %v3396_v21 = vld [vmem:[#allocation6 + $0x19c] ss:$12 sps:$4 sm:$0xff]  }
  0x3d   :  { %1719 = vmatpush1.bf16.msra.mxu0 %v3351_v22  ;;  %2985 = vmatpush3.bf16.msra.mxu1 %v3352_v23  ;;  %v3377_v59 = vld [vmem:[#allocation6 + $0x120] ss:$12 sps:$4 sm:$0xff]   ;;  %v3718_v62 = vcombine.high %v68_v56, %v72_v57  ;;  %v3398_v63 = vld [vmem:[#allocation6 + $0x1b8] ss:$12 sps:$4 sm:$0xff]   ;;  %v3722_v6 = vcombine.low %v68_v56, %v72_v57  ;;  %v3432_v57 = vld [vmem:[#allocation6 + $0x25c] ss:$12 sps:$4 sm:$0xff]  }
  0x3e   :  { %1720 = vmatprep.subr.bf16.mxu0 %v3353_v24  ;;  %2986 = vmatprep.subr.bf16.mxu1 %v3355_v25  ;;  %v3380_v0 = vld [vmem:[#allocation6 + $0x138] ss:$12 sps:$4 sm:$0xff]   ;;  %v3383_v1 = vld [vmem:[#allocation6 + $0x154] ss:$12 sps:$4 sm:$0xff]   ;;  %v3425_v25 = vld [vmem:[#allocation6 + $0x2f0] ss:$12 sps:$4 sm:$0xff]  }
  0x3f   :  { %v76_v2 = vld [vmem:[#allocation3 + $0x100] sm:$0xff]  ;;  %v49_v46 = vld [vmem:[#allocation3 + $0x28] sm:$0xff] }
  0x40   :  { %v80_v4 = vld [vmem:[#allocation3 + $0x120] sm:$0xff] }
  0x41   :  { %1721 = vmatpush1.bf16.msra.mxu0 %v3356_v26  ;;  %2987 = vmatpush3.bf16.msra.mxu1 %v3357_v27  ;;  %v3724_v9 = vcombine.high %v76_v2, %v80_v4  ;;  %v3415_v13 = vld [vmem:[#allocation6 + $0x2c0] ss:$12 sps:$4 sm:$0xff]   ;;  %v3393_v14 = vld [vmem:[#allocation6 + $0x184] ss:$12 sps:$4 sm:$0xff]   ;;  %v3728_v19 = vcombine.low %v76_v2, %v80_v4 }
  0x42   :  { %1722 = vmatprep.subr.bf16.mxu0 %v3358_v28  ;;  %2988 = vmatprep.subr.bf16.mxu1 %v3360_v29  ;;  %v3391_v15 = vld [vmem:[#allocation6 + $0x180] ss:$12 sps:$4 sm:$0xff]   ;;  %v3420_v20 = vld [vmem:[#allocation6 + $0x2d8] ss:$12 sps:$4 sm:$0xff]   ;;  %v3426_v28 = vld [vmem:[#allocation6 + $0x230] ss:$12 sps:$4 sm:$0xff]  }
  0x43   :  { %v3416_v16 = vld [vmem:[#allocation6 + $0x200] ss:$12 sps:$4 sm:$0xff]   ;;  %v3421_v23 = vld [vmem:[#allocation6 + $0x218] ss:$12 sps:$4 sm:$0xff]  }
  0x44   :  { %v84_v17 = vld [vmem:[#allocation3 + $0x140] sm:$0xff] }
  0x45   :  { %1723 = vmatpush1.bf16.msra.mxu0 %v3361_v32  ;;  %2989 = vmatpush3.bf16.msra.mxu1 %v3362_v34  ;;  %v88_v18 = vld [vmem:[#allocation3 + $0x160] sm:$0xff]  ;;  %v3404_v32 = vld [vmem:[#allocation6 + $0x1cc] ss:$12 sps:$4 sm:$0xff]   ;;  %v3402_v34 = vld [vmem:[#allocation6 + $0x1c8] ss:$12 sps:$4 sm:$0xff]  }
  0x46   :  { %1724 = vmatprep.subr.bf16.mxu0 %v3363_v35  ;;  %3038 = vmatprep.subr.bf16.mxu1 %v3381_v45  ;;  %v3730_v22 = vcombine.high %v84_v17, %v88_v18  ;;  %v3394_v24 = vld [vmem:[#allocation6 + $0x198] ss:$12 sps:$4 sm:$0xff]   ;;  %v3401_v26 = vld [vmem:[#allocation6 + $0x1b4] ss:$12 sps:$4 sm:$0xff]   ;;  %v3736_v31 = vcombine.low %v84_v17, %v88_v18  ;;  %v45_v45 = vld [vmem:[#allocation3 + $0x8] sm:$0xff] }
  0x47   :  { %v92_v27 = vld [vmem:[#allocation3 + $0x180] sm:$0xff]  ;;  %v3444_v17 = vld [vmem:[#allocation6 + $0x2bc] ss:$12 sps:$4 sm:$0xff]  }
  0x48   :  { %2193 = vmatmul.mubr.bf16.vlgmr.msra.gmra.mrb[0].mxu1 %v3704_v38  ;;  %v96_v29 = vld [vmem:[#allocation3 + $0x1a0] sm:$0xff] }
  0x49   :  { %1725 = vmatpush1.bf16.msra.mxu0 %v3365_v39  ;;  %2200 = vmatprep.mubr.bf16.mxu1 %v3706_v41  ;;  %v3738_v33 = vcombine.high %v92_v27, %v96_v29  ;;  %v3409_v35 = vld [vmem:[#allocation6 + $0x1e4] ss:$12 sps:$4 sm:$0xff]   ;;  %v3744_v39 = vcombine.low %v92_v27, %v96_v29  ;;  %v3419_v44 = vld [vmem:[#allocation6 + $0x214] ss:$12 sps:$4 sm:$0xff]   ;;  %v3452_v29 = vld [vmem:[#allocation6 + $0x2ec] ss:$12 sps:$4 sm:$0xff]  }
  0x4a   :  { %1726 = vmatprep.subr.bf16.mxu0 %v3366_v40  ;;  %3039 = vmatpush3.bf16.msra.mxu1 %v3382_v47  ;;  %v100_v36 = vld [vmem:[#allocation3 + $0x1c0] sm:$0xff]  ;;  %v3445_v40 = vld [vmem:[#allocation6 + $0x3c8] ss:$12 sps:$4 sm:$0xff]   ;;  %v3417_v47 = vld [vmem:[#allocation6 + $0x210] ss:$12 sps:$4 sm:$0xff]  }
  0x4b   :  { %3040 = vmatprep.subr.bf16.mxu1 %v3389_v52  ;;  %v104_v37 = vld [vmem:[#allocation3 + $0x1e0] sm:$0xff]  ;;  %v3447_v27 = vld [vmem:[#allocation6 + $0x2d0] ss:$12 sps:$4 sm:$0xff]  }
  0x4c   :  { %v3429_v52 = vld [vmem:[#allocation6 + $0x244] ss:$12 sps:$4 sm:$0xff]   ;;  %v3427_v56 = vld [vmem:[#allocation6 + $0x240] ss:$12 sps:$4 sm:$0xff]  }
  0x4d   :  { %1727 = vmatpush1.bf16.msra.mxu0 %v3368_v42  ;;  %v3746_v42 = vcombine.high %v100_v36, %v104_v37  ;;  %v3461_v2 = vld [vmem:[#allocation6 + $0x3f8] ss:$12 sps:$4 sm:$0xff]  }
  0x4e   :  { %1728 = vmatprep.subr.bf16.mxu0 %v3369_v43  ;;  %3041 = vmatpush3.bf16.msra.mxu1 %v3390_v54  ;;  %v3412_v43 = vld [vmem:[#allocation6 + $0x1f8] ss:$12 sps:$4 sm:$0xff]   ;;  %v57_v54 = vld [vmem:[#allocation3 + $0x68] sm:$0xff] }
  0x4f   :  { %3042 = vmatprep.subr.bf16.mxu1 %v3397_v61  ;;  %v3453_v61 = vld [vmem:[#allocation6 + $0x3e0] ss:$12 sps:$4 sm:$0xff]  }
  0x50   :  { %2201 = vmatmul.mubr.bf16.gmra.mrb[4].mxu1 %v3710_v48 }
  0x51   :  { %1729 = vmatpush1.bf16.msra.mxu0 %v3371_v49  ;;  %2208 = vmatprep.mubr.bf16.mxu1 %v3712_v51  ;;  %v3424_v49 = vld [vmem:[#allocation6 + $0x22c] ss:$12 sps:$4 sm:$0xff]  }
  0x52   :  { %1730 = vmatprep.subr.bf16.mxu0 %v3372_v50  ;;  %3043 = vmatpush3.bf16.msra.mxu1 %v3398_v63  ;;  %v3754_v50 = vcombine.high %v45_v45, %v49_v46  ;;  %v61_v63 = vld [vmem:[#allocation3 + $0x88] sm:$0xff] }
  0x53   :  { %3044 = vmatprep.subr.bf16.mxu1 %v3405_v3  ;;  %v3433_v3 = vld [vmem:[#allocation6 + $0x270] ss:$12 sps:$4 sm:$0xff]  }
  0x55   :  { %1731 = vmatpush1.bf16.msra.mxu0 %v3374_v53  ;;  %v53_v53 = vld [vmem:[#allocation3 + $0x48] sm:$0xff] }
  0x56   :  { %1732 = vmatprep.subr.bf16.mxu0 %v3375_v55  ;;  %3045 = vmatpush3.bf16.msra.mxu1 %v3406_v5  ;;  %v3760_v55 = vcombine.low %v45_v45, %v49_v46  ;;  %v3768_v4 = vcombine.low %v53_v53, %v57_v54  ;;  %v3438_v5 = vld [vmem:[#allocation6 + $0x28c] ss:$12 sps:$4 sm:$0xff]  }
  0x57   :  { %3046 = vmatprep.subr.bf16.mxu1 %v3410_v10  ;;  %v3441_v10 = vld [vmem:[#allocation6 + $0x2a4] ss:$12 sps:$4 sm:$0xff]   ;;  %v93_v45 = vld [vmem:[#allocation3 + $0x188] sm:$0xff] }
  0x58   :  { %2209 = vmatmul.mubr.bf16.gmra.mrb[8].mxu1 %v3716_v58  ;;  %v97_v46 = vld [vmem:[#allocation3 + $0x1a8] sm:$0xff] }
  0x59   :  { %1733 = vmatpush1.bf16.msra.mxu0 %v3377_v59  ;;  %2216 = vmatprep.mubr.bf16.mxu1 %v3718_v62  ;;  %v3762_v59 = vcombine.high %v53_v53, %v57_v54  ;;  %v101_v53 = vld [vmem:[#allocation3 + $0x1c8] sm:$0xff] }
  0x5a   :  { %1734 = vmatprep.subr.bf16.mxu0 %v3378_v60  ;;  %3047 = vmatpush3.bf16.msra.mxu1 %v3411_v11  ;;  %v3446_v60 = vld [vmem:[#allocation6 + $0x308] ss:$12 sps:$4 sm:$0xff]  }
  0x5b   :  { %3048 = vmatprep.subr.bf16.mxu1 %v3415_v13  ;;  %v69_v11 = vld [vmem:[#allocation3 + $0xc8] sm:$0xff]  ;;  %v3470_v13 = vld [vmem:[#allocation6 + $0x350] ss:$12 sps:$4 sm:$0xff]  }
  0x5c   :  { %v105_v54 = vld [vmem:[#allocation3 + $0x1e8] sm:$0xff] }
  0x5d   :  { %1735 = vmatpush1.bf16.msra.mxu0 %v3380_v0  ;;  %v65_v0 = vld [vmem:[#allocation3 + $0xa8] sm:$0xff] }
  0x5e   :  { %1736 = vmatprep.subr.bf16.mxu0 %v3383_v1  ;;  %3049 = vmatpush3.bf16.msra.mxu1 %v3416_v16  ;;  %v3454_v1 = vld [vmem:[#allocation6 + $0x320] ss:$12 sps:$4 sm:$0xff]   ;;  %v3776_v16 = vcombine.low %v61_v63, %v65_v0 }
  0x5f   :  { %3050 = vmatprep.subr.bf16.mxu1 %v3420_v20  ;;  %v3479_v20 = vld [vmem:[#allocation6 + $0x440] ss:$12 sps:$4 sm:$0xff]  }
  0x60   :  { %2217 = vmatmul.mubr.bf16.gmra.mrb[12].mxu1 %v3722_v6 }
  0x61   :  { %1737 = vmatpush1.bf16.msra.mxu0 %v3385_v7  ;;  %2224 = vmatprep.mubr.bf16.mxu1 %v3724_v9  ;;  %v3770_v7 = vcombine.high %v61_v63, %v65_v0  ;;  %v3481_v63 = vld [vmem:[#allocation6 + $0x390] ss:$12 sps:$4 sm:$0xff]   ;;  %v3816_v0 = vcombine.low %v101_v53, %v105_v54 }
  0x62   :  { %1738 = vmatprep.subr.bf16.mxu0 %v3386_v8  ;;  %3051 = vmatpush3.bf16.msra.mxu1 %v3421_v23  ;;  %v3462_v8 = vld [vmem:[#allocation6 + $0x338] ss:$12 sps:$4 sm:$0xff]   ;;  %v77_v23 = vld [vmem:[#allocation3 + $0x108] sm:$0xff] }
  0x63   :  { %3052 = vmatprep.subr.bf16.mxu1 %v3425_v25  ;;  %v3480_v25 = vld [vmem:[#allocation6 + $0x380] ss:$12 sps:$4 sm:$0xff]  }
  0x65   :  { %1739 = vmatpush1.bf16.msra.mxu0 %v3388_v12  ;;  %v73_v12 = vld [vmem:[#allocation3 + $0xe8] sm:$0xff] }
  0x66   :  { %1821 = vmatprep.subr.bf16.mxu0 %v3393_v14  ;;  %3053 = vmatpush3.bf16.msra.mxu1 %v3426_v28  ;;  %v3474_v14 = vld [vmem:[#allocation6 + $0x428] ss:$12 sps:$4 sm:$0xff]   ;;  %v3778_v18 = vcombine.high %v69_v11, %v73_v12  ;;  %v3784_v28 = vcombine.low %v69_v11, %v73_v12  ;;  %v3517_v12 = vld [vmem:[#allocation6 + $0x560] ss:$12 sps:$4 sm:$0xff]  }
  0x67   :  { %3102 = vmatprep.subr.bf16.mxu1 %v3445_v40  ;;  %v3510_v11 = vld [vmem:[#allocation6 + $0x488] ss:$12 sps:$4 sm:$0xff]  }
  0x68   :  { %1741 = vmatmul.mubr.bf16.vlgmr.msra.gmra.mrb[0].mxu0 %v3704_v38  ;;  %2225 = vmatmul.mubr.bf16.gmra.mrb[16].mxu1 %v3728_v19  ;;  %v3407_v38 = vld [vmem:[#allocation6 + $0x1e0] ss:$12 sps:$4 sm:$0xff]  }
  0x69   :  { %1822 = vmatpush1.bf16.msra.mxu0 %v3391_v15  ;;  %1750 = vmatprep.mubr.bf16.mxu0 %v3706_v41  ;;  %v3414_v41 = vld [vmem:[#allocation6 + $0x1fc] ss:$12 sps:$4 sm:$0xff]   ;;  %v3439_v15 = vld [vmem:[#allocation6 + $0x2a0] ss:$12 sps:$4 sm:$0xff]  }
  0x6a   :  { %1823 = vmatprep.subr.bf16.mxu0 %v3396_v21  ;;  %2232 = vmatprep.mubr.bf16.mxu1 %v3730_v22  ;;  %v3442_v21 = vld [vmem:[#allocation6 + $0x2b8] ss:$12 sps:$4 sm:$0xff]  }
  0x6d   :  { %1824 = vmatpush1.bf16.msra.mxu0 %v3394_v24  ;;  %v81_v24 = vld [vmem:[#allocation3 + $0x128] sm:$0xff] }
  0x6e   :  { %1825 = vmatprep.subr.bf16.mxu0 %v3401_v26  ;;  %v3484_v26 = vld [vmem:[#allocation6 + $0x458] ss:$12 sps:$4 sm:$0xff]   ;;  %v3792_v40 = vcombine.low %v77_v23, %v81_v24 }
  0x70   :  { %1751 = vmatmul.mubr.bf16.gmra.mrb[4].mxu0 %v3710_v48  ;;  %2233 = vmatmul.mubr.bf16.gmra.mrb[20].mxu1 %v3736_v31  ;;  %v3752_v48 = vcombine.low %v100_v36, %v104_v37  ;;  %v89_v36 = vld [vmem:[#allocation3 + $0x168] sm:$0xff]  ;;  %v3490_v37 = vld [vmem:[#allocation6 + $0x3b0] ss:$12 sps:$4 sm:$0xff]  }
  0x71   :  { %1826 = vmatpush1.bf16.msra.mxu0 %v3399_v30  ;;  %1760 = vmatprep.mubr.bf16.mxu0 %v3712_v51  ;;  %v3422_v51 = vld [vmem:[#allocation6 + $0x228] ss:$12 sps:$4 sm:$0xff]   ;;  %v3786_v30 = vcombine.high %v77_v23, %v81_v24  ;;  %v3526_v23 = vld [vmem:[#allocation6 + $0x4b8] ss:$12 sps:$4 sm:$0xff]   ;;  %v3533_v24 = vld [vmem:[#allocation6 + $0x590] ss:$12 sps:$4 sm:$0xff]  }
  0x72   :  { %1827 = vmatprep.subr.bf16.mxu0 %v3404_v32  ;;  %2240 = vmatprep.mubr.bf16.mxu1 %v3738_v33  ;;  %v3450_v32 = vld [vmem:[#allocation6 + $0x2e8] ss:$12 sps:$4 sm:$0xff]  }
  0x75   :  { %1828 = vmatpush1.bf16.msra.mxu0 %v3402_v34  ;;  %v3457_v34 = vld [vmem:[#allocation6 + $0x304] ss:$12 sps:$4 sm:$0xff]  }
  0x76   :  { %1829 = vmatprep.subr.bf16.mxu0 %v3409_v35  ;;  %v85_v35 = vld [vmem:[#allocation3 + $0x148] sm:$0xff] }
  0x78   :  { %1761 = vmatmul.mubr.bf16.gmra.mrb[8].mxu0 %v3716_v58  ;;  %2241 = vmatmul.mubr.bf16.gmra.mrb[24].mxu1 %v3744_v39  ;;  %v3430_v58 = vld [vmem:[#allocation6 + $0x258] ss:$12 sps:$4 sm:$0xff]  }
  0x79   :  { %1830 = vmatpush1.bf16.msra.mxu0 %v3407_v38  ;;  %1770 = vmatprep.mubr.bf16.mxu0 %v3718_v62  ;;  %v3435_v62 = vld [vmem:[#allocation6 + $0x274] ss:$12 sps:$4 sm:$0xff]  }
  0x7a   :  { %1831 = vmatprep.subr.bf16.mxu0 %v3414_v41  ;;  %2248 = vmatprep.mubr.bf16.mxu1 %v3746_v42  ;;  %v3509_v38 = vld [vmem:[#allocation6 + $0x548] ss:$12 sps:$4 sm:$0xff]  }
  0x7b   :  { %v3460_v41 = vld [vmem:[#allocation6 + $0x31c] ss:$12 sps:$4 sm:$0xff]  }
  0x7d   :  { %1832 = vmatpush1.bf16.msra.mxu0 %v3412_v43  ;;  %v3458_v43 = vld [vmem:[#allocation6 + $0x318] ss:$12 sps:$4 sm:$0xff]  }
  0x7e   :  { %1833 = vmatprep.subr.bf16.mxu0 %v3419_v44  ;;  %v3465_v44 = vld [vmem:[#allocation6 + $0x334] ss:$12 sps:$4 sm:$0xff]  }
  0x80   :  { %1771 = vmatmul.mubr.bf16.gmra.mrb[12].mxu0 %v3722_v6  ;;  %2249 = vmatmul.mubr.bf16.gmra.mrb[28].mxu1 %v3752_v48  ;;  %v3436_v6 = vld [vmem:[#allocation6 + $0x288] ss:$12 sps:$4 sm:$0xff]  }
  0x81   :  { %1834 = vmatpush1.bf16.msra.mxu0 %v3417_v47  ;;  %1780 = vmatprep.mubr.bf16.mxu0 %v3724_v9  ;;  %v3469_v9 = vld [vmem:[#allocation6 + $0x410] ss:$12 sps:$4 sm:$0xff]  }
  0x82   :  { %1835 = vmatprep.subr.bf16.mxu0 %v3424_v49  ;;  %2289 = vmatprep.mubr.bf16.mxu1 %v3754_v50  ;;  %v3463_v47 = vld [vmem:[#allocation6 + $0x330] ss:$12 sps:$4 sm:$0xff]   ;;  %v3468_v49 = vld [vmem:[#allocation6 + $0x34c] ss:$12 sps:$4 sm:$0xff]  }
  0x85   :  { %1836 = vmatpush1.bf16.msra.mxu0 %v3422_v51  ;;  %v3466_v51 = vld [vmem:[#allocation6 + $0x348] ss:$12 sps:$4 sm:$0xff]  }
  0x86   :  { %1837 = vmatprep.subr.bf16.mxu0 %v3429_v52  ;;  %v3473_v52 = vld [vmem:[#allocation6 + $0x364] ss:$12 sps:$4 sm:$0xff]  }
  0x88   :  { %1781 = vmatmul.mubr.bf16.gmra.mrb[16].mxu0 %v3728_v19  ;;  %2290 = vmatmul.mubr.bf16.vlgmr.msra.gmra.mrb[32].mxu1 %v3760_v55  ;;  %v3475_v19 = vld [vmem:[#allocation6 + $0x368] ss:$12 sps:$4 sm:$0xff]  }
  0x89   :  { %1838 = vmatpush1.bf16.msra.mxu0 %v3427_v56  ;;  %1790 = vmatprep.mubr.bf16.mxu0 %v3730_v22  ;;  %v3449_v22 = vld [vmem:[#allocation6 + $0x2d4] ss:$12 sps:$4 sm:$0xff]   ;;  %v3808_v56 = vcombine.low %v93_v45, %v97_v46 }
  0x8a   :  { %1839 = vmatprep.subr.bf16.mxu0 %v3432_v57  ;;  %2297 = vmatprep.mubr.bf16.mxu1 %v3762_v59  ;;  %v3478_v57 = vld [vmem:[#allocation6 + $0x37c] ss:$12 sps:$4 sm:$0xff]  }
  0x8b   :  { %3103 = vmatpush3.bf16.msra.mxu1 %v3446_v60  ;;  %v3483_v60 = vld [vmem:[#allocation6 + $0x394] ss:$12 sps:$4 sm:$0xff]  }
  0x8c   :  { %3104 = vmatprep.subr.bf16.mxu1 %v3453_v61  ;;  %v46_v61 = vld [vmem:[#allocation3 + $0x10] sm:$0xff] }
  0x8d   :  { %1840 = vmatpush1.bf16.msra.mxu0 %v3430_v58  ;;  %v3810_v58 = vcombine.high %v101_v53, %v105_v54  ;;  %v90_v53 = vld [vmem:[#allocation3 + $0x170] sm:$0xff]  ;;  %v3519_v54 = vld [vmem:[#allocation6 + $0x480] ss:$12 sps:$4 sm:$0xff]  }
  0x8e   :  { %1841 = vmatprep.subr.bf16.mxu0 %v3435_v62  ;;  %v50_v62 = vld [vmem:[#allocation3 + $0x30] sm:$0xff] }
  0x8f   :  { %3105 = vmatpush3.bf16.msra.mxu1 %v3454_v1  ;;  %v3488_v1 = vld [vmem:[#allocation6 + $0x3ac] ss:$12 sps:$4 sm:$0xff]  }
  0x90   :  { %1791 = vmatmul.mubr.bf16.gmra.mrb[20].mxu0 %v3736_v31  ;;  %3106 = vmatprep.subr.bf16.mxu1 %v3461_v2  ;;  %v3485_v31 = vld [vmem:[#allocation6 + $0x398] ss:$12 sps:$4 sm:$0xff]   ;;  %v3818_v2 = vcombine.high %v46_v61, %v50_v62 }
  0x91   :  { %2298 = vmatmul.mubr.bf16.gmra.mrb[36].mxu1 %v3768_v4  ;;  %1842 = vmatpush1.bf16.msra.mxu0 %v3433_v3  ;;  %v3486_v3 = vld [vmem:[#allocation6 + $0x3a8] ss:$12 sps:$4 sm:$0xff]  }
  0x92   :  { %1843 = vmatprep.subr.bf16.mxu0 %v3438_v5  ;;  %1800 = vmatprep.mubr.bf16.mxu0 %v3738_v33  ;;  %v3489_v33 = vld [vmem:[#allocation6 + $0x470] ss:$12 sps:$4 sm:$0xff]  }
  0x93   :  { %2305 = vmatprep.mubr.bf16.mxu1 %v3770_v7  ;;  %3107 = vmatpush3.bf16.msra.mxu1 %v3462_v8  ;;  %v54_v5 = vld [vmem:[#allocation3 + $0x50] sm:$0xff]  ;;  %v3491_v8 = vld [vmem:[#allocation6 + $0x3c0] ss:$12 sps:$4 sm:$0xff]  }
  0x94   :  { %3108 = vmatprep.subr.bf16.mxu1 %v3469_v9  ;;  %v3496_v9 = vld [vmem:[#allocation6 + $0x3dc] ss:$12 sps:$4 sm:$0xff]  }
  0x95   :  { %1844 = vmatpush1.bf16.msra.mxu0 %v3436_v6  ;;  %v58_v6 = vld [vmem:[#allocation3 + $0x70] sm:$0xff] }
  0x96   :  { %1845 = vmatprep.subr.bf16.mxu0 %v3441_v10  ;;  %v3826_v10 = vcombine.high %v54_v5, %v58_v6 }
  0x97   :  { %3109 = vmatpush3.bf16.msra.mxu1 %v3470_v13  ;;  %v3494_v13 = vld [vmem:[#allocation6 + $0x3d8] ss:$12 sps:$4 sm:$0xff]  }
  0x98   :  { %1801 = vmatmul.mubr.bf16.gmra.mrb[24].mxu0 %v3744_v39  ;;  %3110 = vmatprep.subr.bf16.mxu1 %v3474_v14  ;;  %v3455_v39 = vld [vmem:[#allocation6 + $0x300] ss:$12 sps:$4 sm:$0xff]  }
  0x99   :  { %2306 = vmatmul.mubr.bf16.gmra.mrb[40].mxu1 %v3776_v16  ;;  %1846 = vmatpush1.bf16.msra.mxu0 %v3439_v15  ;;  %v3499_v14 = vld [vmem:[#allocation6 + $0x3f4] ss:$12 sps:$4 sm:$0xff]  }
  0x9a   :  { %1847 = vmatprep.subr.bf16.mxu0 %v3444_v17  ;;  %1810 = vmatprep.mubr.bf16.mxu0 %v3746_v42  ;;  %v3794_v42 = vcombine.high %v85_v35, %v89_v36  ;;  %v62_v15 = vld [vmem:[#allocation3 + $0x90] sm:$0xff] }
  0x9b   :  { %2313 = vmatprep.mubr.bf16.mxu1 %v3778_v18  ;;  %3111 = vmatpush3.bf16.msra.mxu1 %v3475_v19  ;;  %v66_v17 = vld [vmem:[#allocation3 + $0xb0] sm:$0xff] }
  0x9c   :  { %3112 = vmatprep.subr.bf16.mxu1 %v3479_v20  ;;  %v3497_v19 = vld [vmem:[#allocation6 + $0x3f0] ss:$12 sps:$4 sm:$0xff]   ;;  %v3832_v20 = vcombine.low %v54_v5, %v58_v6  ;;  %v3535_v6 = vld [vmem:[#allocation6 + $0x4e0] ss:$12 sps:$4 sm:$0xff]  }
  0x9d   :  { %1848 = vmatpush1.bf16.msra.mxu0 %v3442_v21  ;;  %v3502_v21 = vld [vmem:[#allocation6 + $0x40c] ss:$12 sps:$4 sm:$0xff]   ;;  %v106_v5 = vld [vmem:[#allocation3 + $0x1f0] sm:$0xff] }
  0x9e   :  { %1849 = vmatprep.subr.bf16.mxu0 %v3449_v22  ;;  %v3834_v22 = vcombine.high %v62_v15, %v66_v17 }
  0x9f   :  { %3113 = vmatpush3.bf16.msra.mxu1 %v3480_v25  ;;  %v3500_v25 = vld [vmem:[#allocation6 + $0x408] ss:$12 sps:$4 sm:$0xff]  }
  0xa0   :  { %1811 = vmatmul.mubr.bf16.gmra.mrb[28].mxu0 %v3752_v48  ;;  %3114 = vmatprep.subr.bf16.mxu1 %v3484_v26  ;;  %v3800_v48 = vcombine.low %v85_v35, %v89_v36  ;;  %v3505_v26 = vld [vmem:[#allocation6 + $0x424] ss:$12 sps:$4 sm:$0xff]   ;;  %v3539_v35 = vld [vmem:[#allocation6 + $0x4e8] ss:$12 sps:$4 sm:$0xff]   ;;  %v3543_v36 = vld [vmem:[#allocation6 + $0x5c0] ss:$12 sps:$4 sm:$0xff]  }
  0xa1   :  { %2314 = vmatmul.mubr.bf16.gmra.mrb[44].mxu1 %v3784_v28  ;;  %1850 = vmatpush1.bf16.msra.mxu0 %v3447_v27  ;;  %v3534_v27 = vld [vmem:[#allocation6 + $0x4d0] ss:$12 sps:$4 sm:$0xff]  }
  0xa2   :  { %1851 = vmatprep.subr.bf16.mxu0 %v3452_v29  ;;  %1853 = vmatprep.mubr.bf16.mxu0 %v3754_v50  ;;  %v3802_v50 = vcombine.high %v93_v45, %v97_v46  ;;  %v74_v29 = vld [vmem:[#allocation3 + $0xf0] sm:$0xff]  ;;  %v3516_v45 = vld [vmem:[#allocation6 + $0x46c] ss:$12 sps:$4 sm:$0xff]  }
  0xa3   :  { %2321 = vmatprep.mubr.bf16.mxu1 %v3786_v30  ;;  %3115 = vmatpush3.bf16.msra.mxu1 %v3485_v31  ;;  %v3503_v31 = vld [vmem:[#allocation6 + $0x420] ss:$12 sps:$4 sm:$0xff]  }
  0xa4   :  { %3116 = vmatprep.subr.bf16.mxu1 %v3489_v33  ;;  %v3508_v33 = vld [vmem:[#allocation6 + $0x43c] ss:$12 sps:$4 sm:$0xff]  }
  0xa5   :  { %1852 = vmatpush1.bf16.msra.mxu0 %v3450_v32  ;;  %v3840_v32 = vcombine.low %v62_v15, %v66_v17 }
  0xa6   :  { %1934 = vmatprep.subr.bf16.mxu0 %v3457_v34 }
  0xa7   :  { %3117 = vmatpush3.bf16.msra.mxu1 %v3490_v37  ;;  %v3506_v37 = vld [vmem:[#allocation6 + $0x438] ss:$12 sps:$4 sm:$0xff]  }
  0xa8   :  { %1854 = vmatmul.mubr.bf16.vlgmr.msra.gmra.mrb[0].mxu0 %v3760_v55  ;;  %3166 = vmatprep.subr.bf16.mxu1 %v3509_v38  ;;  %v3471_v55 = vld [vmem:[#allocation6 + $0x360] ss:$12 sps:$4 sm:$0xff]  }
  0xa9   :  { %2322 = vmatmul.mubr.bf16.gmra.mrb[48].mxu1 %v3792_v40  ;;  %1935 = vmatpush1.bf16.msra.mxu0 %v3455_v39  ;;  %v3513_v38 = vld [vmem:[#allocation6 + $0x454] ss:$12 sps:$4 sm:$0xff]  }
  0xaa   :  { %1936 = vmatprep.subr.bf16.mxu0 %v3460_v41  ;;  %1863 = vmatprep.mubr.bf16.mxu0 %v3762_v59  ;;  %v3476_v59 = vld [vmem:[#allocation6 + $0x378] ss:$12 sps:$4 sm:$0xff]   ;;  %v3544_v39 = vld [vmem:[#allocation6 + $0x500] ss:$12 sps:$4 sm:$0xff]   ;;  %v82_v41 = vld [vmem:[#allocation3 + $0x130] sm:$0xff] }
  0xab   :  { %2329 = vmatprep.mubr.bf16.mxu1 %v3794_v42 }
  0xad   :  { %1937 = vmatpush1.bf16.msra.mxu0 %v3458_v43  ;;  %v3511_v43 = vld [vmem:[#allocation6 + $0x450] ss:$12 sps:$4 sm:$0xff]  }
  0xae   :  { %1938 = vmatprep.subr.bf16.mxu0 %v3465_v44 }
  0xb0   :  { %1864 = vmatmul.mubr.bf16.gmra.mrb[4].mxu0 %v3768_v4  ;;  %v3493_v4 = vld [vmem:[#allocation6 + $0x3c4] ss:$12 sps:$4 sm:$0xff]  }
  0xb1   :  { %2330 = vmatmul.mubr.bf16.gmra.mrb[52].mxu1 %v3800_v48  ;;  %1939 = vmatpush1.bf16.msra.mxu0 %v3463_v47  ;;  %v3549_v47 = vld [vmem:[#allocation6 + $0x518] ss:$12 sps:$4 sm:$0xff]  }
  0xb2   :  { %1940 = vmatprep.subr.bf16.mxu0 %v3468_v49  ;;  %1873 = vmatprep.mubr.bf16.mxu0 %v3770_v7  ;;  %v3824_v7 = vcombine.low %v46_v61, %v50_v62  ;;  %v3514_v49 = vld [vmem:[#allocation6 + $0x468] ss:$12 sps:$4 sm:$0xff]   ;;  %v3527_v62 = vld [vmem:[#allocation6 + $0x4b0] ss:$12 sps:$4 sm:$0xff]  }
  0xb3   :  { %2337 = vmatprep.mubr.bf16.mxu1 %v3802_v50  ;;  %v98_v61 = vld [vmem:[#allocation3 + $0x1b0] sm:$0xff] }
  0xb5   :  { %1941 = vmatpush1.bf16.msra.mxu0 %v3466_v51  ;;  %v3554_v51 = vld [vmem:[#allocation6 + $0x530] ss:$12 sps:$4 sm:$0xff]  }
  0xb6   :  { %1942 = vmatprep.subr.bf16.mxu0 %v3473_v52  ;;  %v86_v52 = vld [vmem:[#allocation3 + $0x150] sm:$0xff] }
  0xb8   :  { %1874 = vmatmul.mubr.bf16.gmra.mrb[8].mxu0 %v3776_v16  ;;  %v3518_v16 = vld [vmem:[#allocation6 + $0x4a0] ss:$12 sps:$4 sm:$0xff]  }
  0xb9   :  { %2338 = vmatmul.mubr.bf16.gmra.mrb[56].mxu1 %v3808_v56  ;;  %1943 = vmatpush1.bf16.msra.mxu0 %v3471_v55 }
  0xba   :  { %1944 = vmatprep.subr.bf16.mxu0 %v3478_v57  ;;  %1883 = vmatprep.mubr.bf16.mxu0 %v3778_v18  ;;  %v3525_v18 = vld [vmem:[#allocation6 + $0x578] ss:$12 sps:$4 sm:$0xff]   ;;  %v3858_v57 = vcombine.high %v86_v52, %v90_v53 }
  0xbb   :  { %2345 = vmatprep.mubr.bf16.mxu1 %v3810_v58 }
  0xbd   :  { %1945 = vmatpush1.bf16.msra.mxu0 %v3476_v59  ;;  %v3529_v59 = vld [vmem:[#allocation6 + $0x4b4] ss:$12 sps:$4 sm:$0xff]  }
  0xbe   :  { %1946 = vmatprep.subr.bf16.mxu0 %v3483_v60  ;;  %v94_v60 = vld [vmem:[#allocation3 + $0x190] sm:$0xff] }
  0xc0   :  { %1884 = vmatmul.mubr.bf16.gmra.mrb[12].mxu0 %v3784_v28  ;;  %v70_v28 = vld [vmem:[#allocation3 + $0xd0] sm:$0xff] }
  0xc1   :  { %2346 = vmatmul.mubr.bf16.gmra.mrb[60].mxu1 %v3816_v0  ;;  %1947 = vmatpush1.bf16.msra.mxu0 %v3481_v63  ;;  %v3842_v34 = vcombine.high %v70_v28, %v74_v29  ;;  %v3848_v44 = vcombine.low %v70_v28, %v74_v29  ;;  %v3864_v63 = vcombine.low %v86_v52, %v90_v53  ;;  %v63_v28 = vld [vmem:[#allocation3 + $0x98] sm:$0xff] }
  0xc2   :  { %1948 = vmatprep.subr.bf16.mxu0 %v3488_v1  ;;  %1893 = vmatprep.mubr.bf16.mxu0 %v3786_v30  ;;  %v3538_v30 = vld [vmem:[#allocation6 + $0x5a8] ss:$12 sps:$4 sm:$0xff]   ;;  %v3866_v1 = vcombine.high %v94_v60, %v98_v61  ;;  %v67_v29 = vld [vmem:[#allocation3 + $0xb8] sm:$0xff] }
  0xc3   :  { %2386 = vmatprep.mubr.bf16.mxu1 %v3818_v2 }
  0xc5   :  { %1949 = vmatpush1.bf16.msra.mxu0 %v3486_v3  ;;  %v3537_v3 = vld [vmem:[#allocation6 + $0x4e4] ss:$12 sps:$4 sm:$0xff]  }
  0xc6   :  { %1950 = vmatprep.subr.bf16.mxu0 %v3493_v4  ;;  %v102_v4 = vld [vmem:[#allocation3 + $0x1d0] sm:$0xff] }
  0xc7   :  { %v3880_v15 = vcombine.low %v102_v4, %v106_v5 }
  0xc8   :  { %1894 = vmatmul.mubr.bf16.gmra.mrb[16].mxu0 %v3792_v40  ;;  %v78_v40 = vld [vmem:[#allocation3 + $0x110] sm:$0xff] }
  0xc9   :  { %2387 = vmatmul.mubr.bf16.vlgmr.msra.gmra.mrb[64].mxu1 %v3824_v7  ;;  %1951 = vmatpush1.bf16.msra.mxu0 %v3491_v8  ;;  %v3850_v46 = vcombine.high %v78_v40, %v82_v41  ;;  %v3856_v55 = vcombine.low %v78_v40, %v82_v41  ;;  %v3542_v8 = vld [vmem:[#allocation6 + $0x4fc] ss:$12 sps:$4 sm:$0xff]  }
  0xca   :  { %1952 = vmatprep.subr.bf16.mxu0 %v3496_v9  ;;  %1903 = vmatprep.mubr.bf16.mxu0 %v3794_v42  ;;  %v3548_v42 = vld [vmem:[#allocation6 + $0x5d8] ss:$12 sps:$4 sm:$0xff]   ;;  %v3874_v9 = vcombine.high %v102_v4, %v106_v5  ;;  %v3572_v40 = vld [vmem:[#allocation6 + $0x5bc] ss:$12 sps:$4 sm:$0xff]  }
  0xcb   :  { %2394 = vmatprep.mubr.bf16.mxu1 %v3826_v10  ;;  %3167 = vmatpush3.bf16.msra.mxu1 %v3510_v11  ;;  %v3547_v11 = vld [vmem:[#allocation6 + $0x514] ss:$12 sps:$4 sm:$0xff]  }
  0xcc   :  { %3168 = vmatprep.subr.bf16.mxu1 %v3517_v12  ;;  %v47_v12 = vld [vmem:[#allocation3 + $0x18] sm:$0xff] }
  0xcd   :  { %1953 = vmatpush1.bf16.msra.mxu0 %v3494_v13  ;;  %v51_v13 = vld [vmem:[#allocation3 + $0x38] sm:$0xff] }
  0xce   :  { %1954 = vmatprep.subr.bf16.mxu0 %v3499_v14  ;;  %v3545_v14 = vld [vmem:[#allocation6 + $0x510] ss:$12 sps:$4 sm:$0xff]   ;;  %v3882_v17 = vcombine.high %v47_v12, %v51_v13 }
  0xcf   :  { %3169 = vmatpush3.bf16.msra.mxu1 %v3518_v16  ;;  %v3552_v16 = vld [vmem:[#allocation6 + $0x52c] ss:$12 sps:$4 sm:$0xff]  }
  0xd0   :  { %1904 = vmatmul.mubr.bf16.gmra.mrb[20].mxu0 %v3800_v48  ;;  %3170 = vmatprep.subr.bf16.mxu1 %v3525_v18  ;;  %v3553_v48 = vld [vmem:[#allocation6 + $0x5f0] ss:$12 sps:$4 sm:$0xff]   ;;  %v3550_v18 = vld [vmem:[#allocation6 + $0x528] ss:$12 sps:$4 sm:$0xff]  }
  0xd1   :  { %2395 = vmatmul.mubr.bf16.gmra.mrb[68].mxu1 %v3832_v20  ;;  %1955 = vmatpush1.bf16.msra.mxu0 %v3497_v19  ;;  %v3557_v19 = vld [vmem:[#allocation6 + $0x544] ss:$12 sps:$4 sm:$0xff]  }
  0xd2   :  { %1956 = vmatprep.subr.bf16.mxu0 %v3502_v21  ;;  %1913 = vmatprep.mubr.bf16.mxu0 %v3802_v50  ;;  %v3521_v50 = vld [vmem:[#allocation6 + $0x484] ss:$12 sps:$4 sm:$0xff]   ;;  %v59_v21 = vld [vmem:[#allocation3 + $0x78] sm:$0xff] }
  0xd3   :  { %2402 = vmatprep.mubr.bf16.mxu1 %v3834_v22  ;;  %3171 = vmatpush3.bf16.msra.mxu1 %v3526_v23  ;;  %v3555_v23 = vld [vmem:[#allocation6 + $0x540] ss:$12 sps:$4 sm:$0xff]  }
  0xd4   :  { %3172 = vmatprep.subr.bf16.mxu1 %v3533_v24  ;;  %v3560_v24 = vld [vmem:[#allocation6 + $0x55c] ss:$12 sps:$4 sm:$0xff]  }
  0xd5   :  { %1957 = vmatpush1.bf16.msra.mxu0 %v3500_v25 }
  0xd6   :  { %1958 = vmatprep.subr.bf16.mxu0 %v3505_v26  ;;  %v3558_v26 = vld [vmem:[#allocation6 + $0x558] ss:$12 sps:$4 sm:$0xff]  }
  0xd7   :  { %3173 = vmatpush3.bf16.msra.mxu1 %v3534_v27  ;;  %v3563_v27 = vld [vmem:[#allocation6 + $0x574] ss:$12 sps:$4 sm:$0xff]  }
  0xd8   :  { %1914 = vmatmul.mubr.bf16.gmra.mrb[24].mxu0 %v3808_v56  ;;  %3174 = vmatprep.subr.bf16.mxu1 %v3538_v30  ;;  %v3524_v56 = vld [vmem:[#allocation6 + $0x49c] ss:$12 sps:$4 sm:$0xff]  }
  0xd9   :  { %2403 = vmatmul.mubr.bf16.gmra.mrb[72].mxu1 %v3840_v32  ;;  %1959 = vmatpush1.bf16.msra.mxu0 %v3503_v31  ;;  %v3561_v30 = vld [vmem:[#allocation6 + $0x570] ss:$12 sps:$4 sm:$0xff]  }
  0xda   :  { %1960 = vmatprep.subr.bf16.mxu0 %v3508_v33  ;;  %1923 = vmatprep.mubr.bf16.mxu0 %v3810_v58  ;;  %v3522_v58 = vld [vmem:[#allocation6 + $0x498] ss:$12 sps:$4 sm:$0xff]   ;;  %v3898_v33 = vcombine.high %v63_v28, %v67_v29 }
  0xdb   :  { %2410 = vmatprep.mubr.bf16.mxu1 %v3842_v34  ;;  %3175 = vmatpush3.bf16.msra.mxu1 %v3539_v35  ;;  %v3569_v35 = vld [vmem:[#allocation6 + $0x5a4] ss:$12 sps:$4 sm:$0xff]  }
  0xdc   :  { %3176 = vmatprep.subr.bf16.mxu1 %v3543_v36  ;;  %v71_v36 = vld [vmem:[#allocation3 + $0xd8] sm:$0xff] }
  0xdd   :  { %1961 = vmatpush1.bf16.msra.mxu0 %v3506_v37  ;;  %v75_v37 = vld [vmem:[#allocation3 + $0xf8] sm:$0xff] }
  0xde   :  { %1962 = vmatprep.subr.bf16.mxu0 %v3513_v38  ;;  %v3567_v38 = vld [vmem:[#allocation6 + $0x5a0] ss:$12 sps:$4 sm:$0xff]   ;;  %v3906_v41 = vcombine.high %v71_v36, %v75_v37 }
  0xdf   :  { %3177 = vmatpush3.bf16.msra.mxu1 %v3544_v39  ;;  %v3904_v39 = vcombine.low %v63_v28, %v67_v29 }
  0xe0   :  { %1924 = vmatmul.mubr.bf16.gmra.mrb[32].mxu0 %v3816_v0  ;;  %3178 = vmatprep.subr.bf16.mxu1 %v3548_v42  ;;  %v3532_v0 = vld [vmem:[#allocation6 + $0x4cc] ss:$12 sps:$4 sm:$0xff]  }
  0xe1   :  { %2411 = vmatmul.mubr.bf16.gmra.mrb[76].mxu1 %v3848_v44  ;;  %1963 = vmatpush1.bf16.msra.mxu0 %v3511_v43  ;;  %v3570_v42 = vld [vmem:[#allocation6 + $0x5b8] ss:$12 sps:$4 sm:$0xff]   ;;  %v3575_v43 = vld [vmem:[#allocation6 + $0x5d4] ss:$12 sps:$4 sm:$0xff]  }
  0xe2   :  { %1964 = vmatprep.subr.bf16.mxu0 %v3516_v45  ;;  %1966 = vmatprep.mubr.bf16.mxu0 %v3818_v2  ;;  %v3530_v2 = vld [vmem:[#allocation6 + $0x4c8] ss:$12 sps:$4 sm:$0xff]   ;;  %v83_v45 = vld [vmem:[#allocation3 + $0x138] sm:$0xff] }
  0xe3   :  { %2418 = vmatprep.mubr.bf16.mxu1 %v3850_v46  ;;  %3179 = vmatpush3.bf16.msra.mxu1 %v3549_v47  ;;  %v3573_v47 = vld [vmem:[#allocation6 + $0x5d0] ss:$12 sps:$4 sm:$0xff]  }
  0xe4   :  { %3180 = vmatprep.subr.bf16.mxu1 %v3553_v48  ;;  %v2747_v48 = vcombine.low %v71_v36, %v75_v37 }
  0xe5   :  { %1965 = vmatpush1.bf16.msra.mxu0 %v3514_v49 }
  0xe6   :  { %2047 = vmatprep.subr.bf16.mxu0 %v3521_v50  ;;  %v3578_v50 = vld [vmem:[#allocation6 + $0x5ec] ss:$12 sps:$4 sm:$0xff]  }
  0xe7   :  { %3181 = vmatpush3.bf16.msra.mxu1 %v3554_v51 }
  0xe8   :  { %1967 = vmatmul.mubr.bf16.vlgmr.msra.gmra.mrb[0].mxu0 %v3824_v7  ;;  %v3872_v7 = vcombine.low %v94_v60, %v98_v61 }
  0xe9   :  { %2419 = vmatmul.mubr.bf16.gmra.mrb[80].mxu1 %v3856_v55  ;;  %2048 = vmatpush1.bf16.msra.mxu0 %v3519_v54  ;;  %v3576_v54 = vld [vmem:[#allocation6 + $0x5e8] ss:$12 sps:$4 sm:$0xff]  }
  0xea   :  { %2049 = vmatprep.subr.bf16.mxu0 %v3524_v56  ;;  %1976 = vmatprep.mubr.bf16.mxu0 %v3826_v10  ;;  %v3540_v10 = vld [vmem:[#allocation6 + $0x4f8] ss:$12 sps:$4 sm:$0xff]  }
  0xeb   :  { %2426 = vmatprep.mubr.bf16.mxu1 %v3858_v57  ;;  %v91_v56 = vld [vmem:[#allocation3 + $0x178] sm:$0xff] }
  0xed   :  { %2050 = vmatpush1.bf16.msra.mxu0 %v3522_v58 }
  0xee   :  { %2051 = vmatprep.subr.bf16.mxu0 %v3529_v59 }
  0xf0   :  { %1977 = vmatmul.mubr.bf16.gmra.mrb[4].mxu0 %v3832_v20  ;;  %v55_v20 = vld [vmem:[#allocation3 + $0x58] sm:$0xff] }
  0xf1   :  { %2427 = vmatmul.mubr.bf16.gmra.mrb[84].mxu1 %v3864_v63  ;;  %2052 = vmatpush1.bf16.msra.mxu0 %v3527_v62  ;;  %v3890_v25 = vcombine.high %v55_v20, %v59_v21  ;;  %v3896_v31 = vcombine.low %v55_v20, %v59_v21 }
  0xf2   :  { %2053 = vmatprep.subr.bf16.mxu0 %v3532_v0  ;;  %1986 = vmatprep.mubr.bf16.mxu0 %v3834_v22  ;;  %v3888_v22 = vcombine.low %v47_v12, %v51_v13  ;;  %v99_v0 = vld [vmem:[#allocation3 + $0x1b8] sm:$0xff] }
  0xf3   :  { %2434 = vmatprep.mubr.bf16.mxu1 %v3866_v1 }
  0xf5   :  { %2054 = vmatpush1.bf16.msra.mxu0 %v3530_v2 }
  0xf6   :  { %2055 = vmatprep.subr.bf16.mxu0 %v3537_v3 }
  0xf8   :  { %1987 = vmatmul.mubr.bf16.gmra.mrb[8].mxu0 %v3840_v32  ;;  %v3566_v32 = vld [vmem:[#allocation6 + $0x58c] ss:$12 sps:$4 sm:$0xff]  }
  0xf9   :  { %2435 = vmatmul.mubr.bf16.gmra.mrb[88].mxu1 %v3872_v7  ;;  %2056 = vmatpush1.bf16.msra.mxu0 %v3535_v6 }
  0xfa   :  { %2057 = vmatprep.subr.bf16.mxu0 %v3542_v8  ;;  %1996 = vmatprep.mubr.bf16.mxu0 %v3842_v34  ;;  %v3564_v34 = vld [vmem:[#allocation6 + $0x588] ss:$12 sps:$4 sm:$0xff]  }
  0xfb   :  { %2442 = vmatprep.mubr.bf16.mxu1 %v3874_v9 }
  0xfd   :  { %2058 = vmatpush1.bf16.msra.mxu0 %v3540_v10  ;;  %v107_v10 = vld [vmem:[#allocation3 + $0x1f8] sm:$0xff] }
  0xfe   :  { %2059 = vmatprep.subr.bf16.mxu0 %v3547_v11 }
 0x100   :  { %1997 = vmatmul.mubr.bf16.gmra.mrb[12].mxu0 %v3848_v44  ;;  %v79_v44 = vld [vmem:[#allocation3 + $0x118] sm:$0xff] }
 0x101   :  { %2443 = vmatmul.mubr.bf16.gmra.mrb[92].mxu1 %v3880_v15  ;;  %2060 = vmatpush1.bf16.msra.mxu0 %v3545_v14  ;;  %v2756_v52 = vcombine.high %v79_v44, %v83_v45  ;;  %v2755_v58 = vcombine.low %v79_v44, %v83_v45 }
 0x102   :  { %2061 = vmatprep.subr.bf16.mxu0 %v3552_v16  ;;  %2006 = vmatprep.mubr.bf16.mxu0 %v3850_v46 }
 0x103   :  { %2483 = vmatprep.mubr.bf16.mxu1 %v3882_v17 }
 0x105   :  { %2062 = vmatpush1.bf16.msra.mxu0 %v3550_v18 }
 0x106   :  { %2063 = vmatprep.subr.bf16.mxu0 %v3557_v19 }
 0x108   :  { %2007 = vmatmul.mubr.bf16.gmra.mrb[16].mxu0 %v3856_v55  ;;  %v87_v55 = vld [vmem:[#allocation3 + $0x158] sm:$0xff] }
 0x109   :  { %2484 = vmatmul.mubr.bf16.vlgmr.msra.gmra.mrb[96].mxu1 %v3888_v22  ;;  %2064 = vmatpush1.bf16.msra.mxu0 %v3555_v23  ;;  %v2764_v60 = vcombine.high %v87_v55, %v91_v56  ;;  %v2763_v2 = vcombine.low %v87_v55, %v91_v56 }
 0x10a   :  { %2065 = vmatprep.subr.bf16.mxu0 %v3560_v24  ;;  %2016 = vmatprep.mubr.bf16.mxu0 %v3858_v57 }
 0x10b   :  { %2491 = vmatprep.mubr.bf16.mxu1 %v3890_v25 }
 0x10d   :  { %2066 = vmatpush1.bf16.msra.mxu0 %v3558_v26 }
 0x10e   :  { %2067 = vmatprep.subr.bf16.mxu0 %v3563_v27 }
 0x110   :  { %2017 = vmatmul.mubr.bf16.gmra.mrb[20].mxu0 %v3864_v63  ;;  %v95_v63 = vld [vmem:[#allocation3 + $0x198] sm:$0xff] }
 0x111   :  { %2492 = vmatmul.mubr.bf16.gmra.mrb[100].mxu1 %v3896_v31  ;;  %2068 = vmatpush1.bf16.msra.mxu0 %v3561_v30  ;;  %v2772_v4 = vcombine.high %v95_v63, %v99_v0  ;;  %v2771_v12 = vcombine.low %v95_v63, %v99_v0 }
 0x112   :  { %2069 = vmatprep.subr.bf16.mxu0 %v3566_v32  ;;  %2026 = vmatprep.mubr.bf16.mxu0 %v3866_v1 }
 0x113   :  { %2499 = vmatprep.mubr.bf16.mxu1 %v3898_v33 }
 0x115   :  { %2070 = vmatpush1.bf16.msra.mxu0 %v3564_v34 }
 0x116   :  { %2071 = vmatprep.subr.bf16.mxu0 %v3569_v35 }
 0x118   :  { %2027 = vmatmul.mubr.bf16.gmra.mrb[24].mxu0 %v3872_v7 }
 0x119   :  { %2500 = vmatmul.mubr.bf16.gmra.mrb[104].mxu1 %v3904_v39  ;;  %2072 = vmatpush1.bf16.msra.mxu0 %v3567_v38 }
 0x11a   :  { %2073 = vmatprep.subr.bf16.mxu0 %v3572_v40  ;;  %2036 = vmatprep.mubr.bf16.mxu0 %v3874_v9  ;;  %v103_v9 = vld [vmem:[#allocation3 + $0x1d8] sm:$0xff] }
 0x11b   :  { %2507 = vmatprep.mubr.bf16.mxu1 %v3906_v41  ;;  %v2990_v46 = vpop.f32.mrb[0].mxu1  ;;  %v2780_v14 = vcombine.high %v103_v9, %v107_v10  ;;  %v2779_v20 = vcombine.low %v103_v9, %v107_v10 }
 0x11c   :  { %v2991_v49 = vpop.f32.mrb[1].mxu1 }
 0x11d   :  { %2074 = vmatpush1.bf16.msra.mxu0 %v3570_v42  ;;  %v2993_v51 = vpop.f32.mrb[2].mxu1 }
 0x11e   :  { %2075 = vmatprep.subr.bf16.mxu0 %v3575_v43  ;;  %v2994_v53 = vpop.f32.mrb[3].mxu1 }
 0x120   :  { %2037 = vmatmul.mubr.bf16.gmra.mrb[36].mxu0 %v3880_v15 }
 0x121   :  { %2508 = vmatmul.mubr.bf16.gmra.mrb[108].mxu1 %v2747_v48  ;;  %2076 = vmatpush1.bf16.msra.mxu0 %v3573_v47 }
 0x122   :  { %2077 = vmatprep.subr.bf16.mxu0 %v3578_v50  ;;  %2079 = vmatprep.mubr.bf16.mxu0 %v3882_v17 }
 0x123   :  { %2515 = vmatprep.mubr.bf16.mxu1 %v2756_v52  ;;  %v2996_v57 = vpop.f32.mrb[4].mxu1 }
 0x124   :  { %v2997_v59 = vpop.f32.mrb[5].mxu1 }
 0x125   :  { %2078 = vmatpush1.bf16.msra.mxu0 %v3576_v54  ;;  %v2999_v61 = vpop.f32.mrb[6].mxu1 }
 0x126   :  { %v3000_v62 = vpop.f32.mrb[7].mxu1 }
 0x128   :  { %2080 = vmatmul.mubr.bf16.vlgmr.msra.gmra.mrb[0].mxu0 %v3888_v22 }
 0x129   :  { %2516 = vmatmul.mubr.bf16.gmra.mrb[112].mxu1 %v2755_v58  ;;  %2089 = vmatprep.mubr.bf16.mxu0 %v3890_v25 }
 0x12a   :  { %2523 = vmatprep.mubr.bf16.mxu1 %v2764_v60 }
 0x12b   :  { %v3002_v1 = vpop.f32.mrb[8].mxu1 }
 0x12c   :  { %v3003_v3 = vpop.f32.mrb[9].mxu1 }
 0x12d   :  { %v3916_v5 = vadd.f32 %v3003_v3, %v3002_v1  ;;  %v3005_v6 = vpop.f32.mrb[10].mxu1 }
 0x12e   :  { %v3006_v7 = vpop.f32.mrb[11].mxu1 }
 0x12f   :  { %v3919_v8 = vadd.f32 %v3006_v7, %v3005_v6 }
 0x130   :  { %2090 = vmatmul.mubr.bf16.gmra.mrb[4].mxu0 %v3896_v31 }
 0x131   :  { %2524 = vmatmul.mubr.bf16.gmra.mrb[116].mxu1 %v2763_v2  ;;  %2099 = vmatprep.mubr.bf16.mxu0 %v3898_v33 }
 0x132   :  { %2531 = vmatprep.mubr.bf16.mxu1 %v2772_v4 }
 0x133   :  { %v3008_v11 = vpop.f32.mrb[12].mxu1 }
 0x134   :  { %v3009_v13 = vpop.f32.mrb[13].mxu1 }
 0x135   :  { %v3922_v15 = vadd.f32 %v3009_v13, %v3008_v11  ;;  %v3011_v16 = vpop.f32.mrb[14].mxu1 }
 0x136   :  { %v3012_v17 = vpop.f32.mrb[15].mxu1 }
 0x137   :  { %v3925_v18 = vadd.f32 %v3012_v17, %v3011_v16 }
 0x138   :  { %2100 = vmatmul.mubr.bf16.gmra.mrb[8].mxu0 %v3904_v39 }
 0x139   :  { %2532 = vmatmul.mubr.bf16.gmra.mrb[120].mxu1 %v2771_v12  ;;  %2109 = vmatprep.mubr.bf16.mxu0 %v3906_v41 }
 0x13a   :  { %2539 = vmatprep.mubr.bf16.mxu1 %v2780_v14 }
 0x13b   :  { %v3014_v19 = vpop.f32.mrb[16].mxu1 }
 0x13c   :  { %v3015_v21 = vpop.f32.mrb[17].mxu1 }
 0x13d   :  { %v3928_v22 = vadd.f32 %v3015_v21, %v3014_v19  ;;  %v3017_v23 = vpop.f32.mrb[18].mxu1 }
 0x13e   :  { %v3018_v24 = vpop.f32.mrb[19].mxu1 }
 0x13f   :  { %v3930_v25 = vadd.f32 %v3018_v24, %v3017_v23 }
 0x140   :  { %2110 = vmatmul.mubr.bf16.gmra.mrb[12].mxu0 %v2747_v48 }
 0x141   :  { %2540 = vmatmul.mubr.bf16.gmra.mrb[124].mxu1 %v2779_v20  ;;  %2119 = vmatprep.mubr.bf16.mxu0 %v2756_v52 }
 0x143   :  { %v3020_v26 = vpop.f32.mrb[20].mxu1 }
 0x144   :  { %v3021_v27 = vpop.f32.mrb[21].mxu1 }
 0x145   :  { %v3932_v28 = vadd.f32 %v3021_v27, %v3020_v26  ;;  %v3023_v29 = vpop.f32.mrb[22].mxu1 }
 0x146   :  { %v3024_v30 = vpop.f32.mrb[23].mxu1 }
 0x147   :  { %v3025_v31 = vadd.f32 %v3024_v30, %v3023_v29 }
 0x148   :  { %2120 = vmatmul.mubr.bf16.gmra.mrb[16].mxu0 %v2755_v58 }
 0x149   :  { %2129 = vmatprep.mubr.bf16.mxu0 %v2764_v60 }
 0x14b   :  { %v3026_v32 = vpop.f32.mrb[24].mxu1 }
 0x14c   :  { %v3027_v33 = vpop.f32.mrb[25].mxu1 }
 0x14d   :  { %v3934_v34 = vadd.f32 %v3027_v33, %v3026_v32  ;;  %v3029_v35 = vpop.f32.mrb[26].mxu1 }
 0x14e   :  { %v3030_v36 = vpop.f32.mrb[27].mxu1 }
 0x14f   :  { %v3031_v37 = vadd.f32 %v3030_v36, %v3029_v35 }
 0x150   :  { %2130 = vmatmul.mubr.bf16.gmra.mrb[20].mxu0 %v2763_v2 }
 0x151   :  { %2139 = vmatprep.mubr.bf16.mxu0 %v2772_v4 }
 0x153   :  { %v3032_v38 = vpop.f32.mrb[28].mxu1 }
 0x154   :  { %v3033_v39 = vpop.f32.mrb[29].mxu1 }
 0x155   :  { %v3936_v40 = vadd.f32 %v3033_v39, %v3032_v38  ;;  %v3035_v41 = vpop.f32.mrb[30].mxu1 }
 0x156   :  { %v3036_v42 = vpop.f32.mrb[31].mxu1 }
 0x157   :  { %v3037_v43 = vadd.f32 %v3036_v42, %v3035_v41 }
 0x158   :  { %2140 = vmatmul.mubr.bf16.gmra.mrb[24].mxu0 %v2771_v12 }
 0x159   :  { %2149 = vmatprep.mubr.bf16.mxu0 %v2780_v14 }
 0x15b   :  { %v3054_v44 = vpop.f32.mrb[32].mxu1 }
 0x15c   :  { %v3055_v45 = vpop.f32.mrb[33].mxu1 }
 0x15d   :  { %v3057_v46 = vpop.f32.mrb[34].mxu1 }
 0x15e   :  { %v3058_v47 = vpop.f32.mrb[35].mxu1 }
 0x160   :  { %2150 = vmatmul.mubr.bf16.gmra.mrb[40].mxu0 %v2779_v20 }
 0x164   :  { %v3060_v48 = vpop.f32.mrb[36].mxu1 }
 0x165   :  { %v3061_v49 = vpop.f32.mrb[37].mxu1 }
 0x166   :  { %v3063_v50 = vpop.f32.mrb[38].mxu1 }
 0x167   :  { %v3064_v51 = vpop.f32.mrb[39].mxu1 }
 0x16c   :  { %v3066_v52 = vpop.f32.mrb[40].mxu1 }
 0x16d   :  { %v3067_v53 = vpop.f32.mrb[41].mxu1 }
 0x16e   :  { %v3068_v54 = vadd.f32 %v3067_v53, %v3066_v52  ;;  %v3069_v55 = vpop.f32.mrb[42].mxu1 }
 0x16f   :  { %v3070_v56 = vpop.f32.mrb[43].mxu1 }
 0x170   :  { %v2308_v57 = vadd.f32 %v3068_v54, %v3916_v5  ;;  %v3071_v58 = vadd.f32 %v3070_v56, %v3069_v55 }
 0x172   :  { %v2311_v59 = vadd.f32 %v3071_v58, %v3919_v8 }
 0x173   :  { %v1812_v60 = vpop.f32.mrb[28].mxu0 }
 0x174   :  { %v3072_v61 = vpop.f32.mrb[44].mxu1  ;;  %v1814_v62 = vpop.f32.mrb[29].mxu0 }
 0x175   :  { %v3073_v63 = vpop.f32.mrb[45].mxu1  ;;  %v1816_v0 = vpop.f32.mrb[30].mxu0 }
 0x176   :  { %v3074_v1 = vadd.f32 %v3073_v63, %v3072_v61  ;;  %v3075_v2 = vpop.f32.mrb[46].mxu1  ;;  %v1818_v3 = vpop.f32.mrb[31].mxu0 }
 0x177   :  { %v3076_v4 = vpop.f32.mrb[47].mxu1 }
 0x178   :  { %v2316_v6 = vadd.f32 %v3074_v1, %v3922_v15  ;;  %v3077_v7 = vadd.f32 %v3076_v4, %v3075_v2 }
 0x17a   :  { %v2319_v9 = vadd.f32 %v3077_v7, %v3925_v18 }
 0x17c   :  { %v3078_v10 = vpop.f32.mrb[48].mxu1 }
 0x17d   :  { %v3079_v11 = vpop.f32.mrb[49].mxu1 }
 0x17e   :  { %v3080_v5 = vadd.f32 %v3079_v11, %v3078_v10  ;;  %v3081_v12 = vpop.f32.mrb[50].mxu1 }
 0x17f   :  { %v3082_v13 = vpop.f32.mrb[51].mxu1 }
 0x180   :  { %v2324_v8 = vadd.f32 %v3080_v5, %v3928_v22  ;;  %v3083_v14 = vadd.f32 %v3082_v13, %v3081_v12 }
 0x182   :  { %v2327_v16 = vadd.f32 %v3083_v14, %v3930_v25 }
 0x184   :  { %v3084_v17 = vpop.f32.mrb[52].mxu1 }
 0x185   :  { %v3085_v19 = vpop.f32.mrb[53].mxu1 }
 0x186   :  { %v3086_v20 = vadd.f32 %v3085_v19, %v3084_v17  ;;  %v3087_v21 = vpop.f32.mrb[54].mxu1 }
 0x187   :  { %v3088_v23 = vpop.f32.mrb[55].mxu1 }
 0x188   :  { %v2332_v15 = vadd.f32 %v3086_v20, %v3932_v28  ;;  %v3089_v24 = vadd.f32 %v3088_v23, %v3087_v21 }
 0x18a   :  { %v2335_v26 = vadd.f32 %v3089_v24, %v3025_v31 }
 0x18c   :  { %v3090_v18 = vpop.f32.mrb[56].mxu1 }
 0x18d   :  { %v3091_v27 = vpop.f32.mrb[57].mxu1 }
 0x18e   :  { %v3092_v29 = vadd.f32 %v3091_v27, %v3090_v18  ;;  %v3093_v30 = vpop.f32.mrb[58].mxu1 }
 0x18f   :  { %v3094_v32 = vpop.f32.mrb[59].mxu1 }
 0x190   :  { %v2340_v33 = vadd.f32 %v3092_v29, %v3934_v34  ;;  %v3095_v22 = vadd.f32 %v3094_v32, %v3093_v30 }
 0x192   :  { %v2343_v35 = vadd.f32 %v3095_v22, %v3031_v37 }
 0x194   :  { %v3096_v36 = vpop.f32.mrb[60].mxu1 }
 0x195   :  { %v3097_v25 = vpop.f32.mrb[61].mxu1 }
 0x196   :  { %v3098_v38 = vadd.f32 %v3097_v25, %v3096_v36  ;;  %v3099_v39 = vpop.f32.mrb[62].mxu1 }
 0x197   :  { %v3100_v41 = vpop.f32.mrb[63].mxu1 }
 0x198   :  { %v2348_v42 = vadd.f32 %v3098_v38, %v3936_v40  ;;  %v3101_v44 = vadd.f32 %v3100_v41, %v3099_v39 }
 0x19a   :  { %v2351_v28 = vadd.f32 %v3101_v44, %v3037_v43 }
 0x19c   :  { %v3118_v45 = vpop.f32.mrb[64].mxu1 }
 0x19d   :  { %v3119_v31 = vpop.f32.mrb[65].mxu1 }
 0x19e   :  { %v3121_v46 = vpop.f32.mrb[66].mxu1 }
 0x19f   :  { %v3122_v47 = vpop.f32.mrb[67].mxu1 }
 0x1a4   :  { %v3124_v48 = vpop.f32.mrb[68].mxu1 }
 0x1a5   :  { %v3125_v49 = vpop.f32.mrb[69].mxu1 }
 0x1a6   :  { %v3127_v50 = vpop.f32.mrb[70].mxu1 }
 0x1a7   :  { %v3128_v51 = vpop.f32.mrb[71].mxu1 }
 0x1ac   :  { %v3130_v34 = vpop.f32.mrb[72].mxu1 }
 0x1ad   :  { %v3131_v52 = vpop.f32.mrb[73].mxu1 }
 0x1ae   :  { %v3132_v37 = vadd.f32 %v3131_v52, %v3130_v34  ;;  %v3133_v53 = vpop.f32.mrb[74].mxu1 }
 0x1af   :  { %v3134_v54 = vpop.f32.mrb[75].mxu1 }
 0x1b0   :  { %v2405_v55 = vadd.f32 %v3132_v37, %v2308_v57  ;;  %v3135_v56 = vadd.f32 %v3134_v54, %v3133_v53 }
 0x1b2   :  { %v2408_v58 = vadd.f32 %v3135_v56, %v2311_v59 }
 0x1b3   :  { %v1925_v60 = vpop.f32.mrb[32].mxu0 }
 0x1b4   :  { %v3136_v40 = vpop.f32.mrb[76].mxu1  ;;  %v1927_v61 = vpop.f32.mrb[33].mxu0 }
 0x1b5   :  { %v3137_v43 = vpop.f32.mrb[77].mxu1  ;;  %v1929_v62 = vpop.f32.mrb[34].mxu0 }
 0x1b6   :  { %v3138_v63 = vadd.f32 %v3137_v43, %v3136_v40  ;;  %v3139_v0 = vpop.f32.mrb[78].mxu1  ;;  %v1931_v1 = vpop.f32.mrb[35].mxu0 }
 0x1b7   :  { %v3140_v2 = vpop.f32.mrb[79].mxu1 }
 0x1b8   :  { %v2413_v3 = vadd.f32 %v3138_v63, %v2316_v6  ;;  %v3141_v4 = vadd.f32 %v3140_v2, %v3139_v0 }
 0x1ba   :  { %v2416_v7 = vadd.f32 %v3141_v4, %v2319_v9 }
 0x1bc   :  { %v3142_v10 = vpop.f32.mrb[80].mxu1 }
 0x1bd   :  { %v3143_v11 = vpop.f32.mrb[81].mxu1 }
 0x1be   :  { %v3144_v5 = vadd.f32 %v3143_v11, %v3142_v10  ;;  %v3145_v12 = vpop.f32.mrb[82].mxu1 }
 0x1bf   :  { %v3146_v13 = vpop.f32.mrb[83].mxu1 }
 0x1c0   :  { %v3947_v57 = vadd.f32 %v3144_v5, %v2324_v8  ;;  %v3147_v59 = vadd.f32 %v3146_v13, %v3145_v12 }
 0x1c2   :  { %v3949_v14 = vadd.f32 %v3147_v59, %v2327_v16 }
 0x1c4   :  { %v3148_v17 = vpop.f32.mrb[84].mxu1 }
 0x1c5   :  { %v3149_v19 = vpop.f32.mrb[85].mxu1 }
 0x1c6   :  { %v3150_v20 = vadd.f32 %v3149_v19, %v3148_v17  ;;  %v3151_v21 = vpop.f32.mrb[86].mxu1 }
 0x1c7   :  { %v3152_v23 = vpop.f32.mrb[87].mxu1 }
 0x1c8   :  { %v3951_v24 = vadd.f32 %v3150_v20, %v2332_v15  ;;  %v3153_v6 = vadd.f32 %v3152_v23, %v3151_v21 }
 0x1ca   :  { %v3953_v18 = vadd.f32 %v3153_v6, %v2335_v26 }
 0x1cc   :  { %v3154_v9 = vpop.f32.mrb[88].mxu1 }
 0x1cd   :  { %v3155_v27 = vpop.f32.mrb[89].mxu1 }
 0x1ce   :  { %v3156_v29 = vadd.f32 %v3155_v27, %v3154_v9  ;;  %v3157_v30 = vpop.f32.mrb[90].mxu1 }
 0x1cf   :  { %v3158_v32 = vpop.f32.mrb[91].mxu1 }
 0x1d0   :  { %v3955_v8 = vadd.f32 %v3156_v29, %v2340_v33  ;;  %v3159_v22 = vadd.f32 %v3158_v32, %v3157_v30 }
 0x1d2   :  { %v3957_v16 = vadd.f32 %v3159_v22, %v2343_v35 }
 0x1d4   :  { %v3160_v36 = vpop.f32.mrb[92].mxu1 }
 0x1d5   :  { %v3161_v25 = vpop.f32.mrb[93].mxu1 }
 0x1d6   :  { %v3162_v38 = vadd.f32 %v3161_v25, %v3160_v36  ;;  %v3163_v39 = vpop.f32.mrb[94].mxu1 }
 0x1d7   :  { %v3164_v41 = vpop.f32.mrb[95].mxu1 }
 0x1d8   :  { %v3959_v15 = vadd.f32 %v3162_v38, %v2348_v42  ;;  %v3165_v44 = vadd.f32 %v3164_v41, %v3163_v39 }
 0x1da   :  { %v3961_v26 = vadd.f32 %v3165_v44, %v2351_v28 }
 0x1dc   :  { %v3182_v45 = vpop.f32.mrb[96].mxu1 }
 0x1dd   :  { %v3183_v31 = vpop.f32.mrb[97].mxu1 }
 0x1de   :  { %v3185_v46 = vpop.f32.mrb[98].mxu1 }
 0x1df   :  { %v3186_v47 = vpop.f32.mrb[99].mxu1 }
 0x1e4   :  { %v3188_v48 = vpop.f32.mrb[100].mxu1 }
 0x1e5   :  { %v3189_v33 = vpop.f32.mrb[101].mxu1 }
 0x1e6   :  { %v3191_v49 = vpop.f32.mrb[102].mxu1 }
 0x1e7   :  { %v3192_v50 = vpop.f32.mrb[103].mxu1 }
 0x1ec   :  { %v3194_v35 = vpop.f32.mrb[104].mxu1 }
 0x1ed   :  { %v3195_v51 = vpop.f32.mrb[105].mxu1 }
 0x1ee   :  { %v3196_v34 = vadd.f32 %v3195_v51, %v3194_v35  ;;  %v3197_v52 = vpop.f32.mrb[106].mxu1 }
 0x1ef   :  { %v3198_v37 = vpop.f32.mrb[107].mxu1 }
 0x1f0   :  { %v2502_v53 = vadd.f32 %v3196_v34, %v2405_v55  ;;  %v3199_v54 = vadd.f32 %v3198_v37, %v3197_v52 }
 0x1f2   :  { %v2505_v42 = vadd.f32 %v3199_v54, %v2408_v58 }
 0x1f3   :  { %v2038_v56 = vpop.f32.mrb[36].mxu0 }
 0x1f4   :  { %v3200_v60 = vpop.f32.mrb[108].mxu1  ;;  %v2040_v28 = vpop.f32.mrb[37].mxu0 }
 0x1f5   :  { %v3201_v40 = vpop.f32.mrb[109].mxu1  ;;  %v2042_v61 = vpop.f32.mrb[38].mxu0 }
 0x1f6   :  { %v3202_v43 = vadd.f32 %v3201_v40, %v3200_v60  ;;  %v3203_v62 = vpop.f32.mrb[110].mxu1  ;;  %v2044_v63 = vpop.f32.mrb[39].mxu0 }
 0x1f7   :  { %v3204_v0 = vpop.f32.mrb[111].mxu1 }
 0x1f8   :  { %v2510_v1 = vadd.f32 %v3202_v43, %v2413_v3  ;;  %v3205_v2 = vadd.f32 %v3204_v0, %v3203_v62 }
 0x1fa   :  { %v2513_v4 = vadd.f32 %v3205_v2, %v2416_v7 }
 0x1fb   :  { %v2081_v10 = vpop.f32.mrb[0].mxu0 }
 0x1fc   :  { %v3206_v11 = vpop.f32.mrb[112].mxu1  ;;  %v2083_v5 = vpop.f32.mrb[1].mxu0 }
 0x1fd   :  { %v3207_v12 = vpop.f32.mrb[113].mxu1  ;;  %v2085_v13 = vpop.f32.mrb[2].mxu0 }
 0x1fe   :  { %v3208_v55 = vadd.f32 %v3207_v12, %v3206_v11  ;;  %v3209_v59 = vpop.f32.mrb[114].mxu1  ;;  %v2087_v58 = vpop.f32.mrb[3].mxu0 }
 0x1ff   :  { %v3210_v17 = vpop.f32.mrb[115].mxu1 }
 0x200   :  { %v2518_v19 = vadd.f32 %v3208_v55, %v3947_v57  ;;  %v3211_v20 = vadd.f32 %v3210_v17, %v3209_v59 }
 0x202   :  { %v2521_v21 = vadd.f32 %v3211_v20, %v3949_v14  ;;  %v3970_v14 = vld [vmem:[%s4002_s2] ss:$0 sm:$0xff]  ;;  %s3657_s2 = smov [#allocation8]  }
 0x203   :  { %v2091_v23 = vpop.f32.mrb[4].mxu0  ;;  %s2704_s13 = sshll.u32 %s3657_s2, 4  ;;  %s2705_s13 = int_to_ptr.vmem [resolvable:$true] %s2704_s13 }
 0x204   :  { %v3212_v6 = vpop.f32.mrb[116].mxu1  ;;  %v2093_v9 = vpop.f32.mrb[5].mxu0  ;;  %s3623_s14 = scalar_lea.vmem %s2705_s13, 256  ;;  %p3628_p3 = scmp.lt.s32.totalorder %s2705_s13, %s2705_s13 }
 0x205   :  { %v2603_v3 = vadd.f32 %v2093_v9, %v2081_v10  ;;  %v3213_v27 = vpop.f32.mrb[117].mxu1  ;;  %v2095_v7 = vpop.f32.mrb[6].mxu0  ;;  %p3624_p2 = scmp.ne.s32.totalorder %s2705_s13, %s3623_s14  ;;  %p3629_p4 = scmp.lt.s32.totalorder %s3623_s14, %s3623_s14 }
 0x206   :  { %v3214_v29 = vadd.f32 %v3213_v27, %v3212_v6  ;;  %v3215_v30 = vpop.f32.mrb[118].mxu1  ;;  %v2097_v32 = vpop.f32.mrb[7].mxu0 }
 0x207   :  { %v2605_v22 = vadd.f32 %v2603_v3, %v2502_v53  ;;  %v2604_v36 = vadd.f32 %v2097_v32, %v2085_v13  ;;  %v3216_v25 = vpop.f32.mrb[119].mxu1  ;;  %p3630_p5 = por %p3629_p4, %p3628_p3 }
 0x208   :  { %v2526_v38 = vadd.f32 %v3214_v29, %v3951_v24  ;;  %v3217_v39 = vadd.f32 %v3216_v25, %v3215_v30 }
 0x209   :  { %v2606_v41 = vadd.f32 %v2604_v36, %v2505_v42  ;;  %v2613_v24 = vadd.f32 %v3970_v14, %v2605_v22  ;;  %p3631_p6 = pnand %p3630_p5, %p3624_p2 }
 0x20a   :  { %v2529_v57 = vadd.f32 %v3217_v39, %v3953_v18 }
 0x20b   :  { %v2101_v44 = vpop.f32.mrb[8].mxu0  ;;  %v2614_v37 = vadd.f32 %v3970_v14, %v2606_v41  ;;  %v2615_v56 = vmax.f32 %v2613_v24, 0.0 }
 0x20c   :  { %v3218_v45 = vpop.f32.mrb[120].mxu1  ;;  %v2103_v31 = vpop.f32.mrb[9].mxu0 }
 0x20d   :  { %v2623_v46 = vadd.f32 %v2103_v31, %v2091_v23  ;;  %v3219_v47 = vpop.f32.mrb[121].mxu1  ;;  %v2105_v48 = vpop.f32.mrb[10].mxu0  ;;  %v2616_v62 = vmax.f32 %v2614_v37, 0.0 }
 0x20e   :  { %v3220_v33 = vadd.f32 %v3219_v47, %v3218_v45  ;;  %v3221_v49 = vpop.f32.mrb[122].mxu1  ;;  %v2107_v50 = vpop.f32.mrb[11].mxu0 }
 0x20f   :  { %v2625_v35 = vadd.f32 %v2623_v46, %v2510_v1  ;;  %v2624_v51 = vadd.f32 %v2107_v50, %v2095_v7  ;;  %v3222_v34 = vpop.f32.mrb[123].mxu1 }
 0x210   :  { %v2534_v18 = vadd.f32 %v3220_v33, %v3955_v8  ;;  %v3223_v52 = vadd.f32 %v3222_v34, %v3221_v49 }
 0x211   :  { %v2627_v53 = vadd.f32 %v3970_v14, %v2625_v35  ;;  %v2626_v54 = vadd.f32 %v2624_v51, %v2513_v4 }
 0x212   :  { %v2537_v42 = vadd.f32 %v3223_v52, %v3957_v16 }
 0x213   :  { %v2629_v60 = vmax.f32 %v2627_v53, 0.0  ;;  %v2628_v28 = vadd.f32 %v3970_v14, %v2626_v54  ;;  %v2111_v40 = vpop.f32.mrb[12].mxu0 }
 0x214   :  { %v3224_v61 = vpop.f32.mrb[124].mxu1  ;;  %v2113_v43 = vpop.f32.mrb[13].mxu0 }
 0x215   :  { %v2631_v63 = vmax.f32 %v2615_v56, %v2629_v60  ;;  %v2630_v0 = vmax.f32 %v2628_v28, 0.0  ;;  %v2639_v1 = vadd.f32 %v2113_v43, %v2101_v44  ;;  %v3225_v8 = vpop.f32.mrb[125].mxu1  ;;  %v2115_v2 = vpop.f32.mrb[14].mxu0 }
 0x216   :  { %v3226_v10 = vadd.f32 %v3225_v8, %v3224_v61  ;;  %v3227_v11 = vpop.f32.mrb[126].mxu1  ;;  %v2117_v5 = vpop.f32.mrb[15].mxu0 }
 0x217   :  { %v2632_v12 = vmax.f32 %v2616_v62, %v2630_v0  ;;  %v2641_v4 = vadd.f32 %v2639_v1, %v2518_v19  ;;  %v2640_v13 = vadd.f32 %v2117_v5, %v2105_v48  ;;  %v3228_v16 = vpop.f32.mrb[127].mxu1 }
 0x218   :  { %v2542_v55 = vadd.f32 %v3226_v10, %v3959_v15  ;;  %v3229_v59 = vadd.f32 %v3228_v16, %v3227_v11 }
 0x219   :  { %v2643_v58 = vadd.f32 %v3970_v14, %v2641_v4  ;;  %v2642_v17 = vadd.f32 %v2640_v13, %v2521_v21 }
 0x21a   :  { %v2545_v20 = vadd.f32 %v3229_v59, %v3961_v26 }
 0x21b   :  { %v2645_v23 = vmax.f32 %v2643_v58, 0.0  ;;  %v2644_v6 = vadd.f32 %v3970_v14, %v2642_v17  ;;  %v2121_v9 = vpop.f32.mrb[16].mxu0 }
 0x21c   :  { %v2123_v3 = vpop.f32.mrb[17].mxu0 }
 0x21d   :  { %v2647_v27 = vmax.f32 %v2631_v63, %v2645_v23  ;;  %v2646_v7 = vmax.f32 %v2644_v6, 0.0  ;;  %v2655_v29 = vadd.f32 %v2123_v3, %v2111_v40  ;;  %v2125_v30 = vpop.f32.mrb[18].mxu0 }
 0x21e   :  { %v2127_v19 = vpop.f32.mrb[19].mxu0 }
 0x21f   :  { %v2648_v32 = vmax.f32 %v2632_v12, %v2646_v7  ;;  %v2657_v22 = vadd.f32 %v2655_v29, %v2526_v38  ;;  %v2656_v36 = vadd.f32 %v2127_v19, %v2115_v2 }
 0x221   :  { %v2659_v15 = vadd.f32 %v3970_v14, %v2657_v22  ;;  %v2658_v25 = vadd.f32 %v2656_v36, %v2529_v57 }
 0x223   :  { %v2661_v39 = vmax.f32 %v2659_v15, 0.0  ;;  %v2660_v21 = vadd.f32 %v3970_v14, %v2658_v25  ;;  %v2131_v26 = vpop.f32.mrb[20].mxu0 }
 0x224   :  { %v2133_v41 = vpop.f32.mrb[21].mxu0 }
 0x225   :  { %v2663_v44 = vmax.f32 %v2647_v27, %v2661_v39  ;;  %v2662_v45 = vmax.f32 %v2660_v21, 0.0  ;;  %v2671_v31 = vadd.f32 %v2133_v41, %v2121_v9  ;;  %v2135_v46 = vpop.f32.mrb[22].mxu0 }
 0x226   :  { %v2137_v47 = vpop.f32.mrb[23].mxu0 }
 0x227   :  { %v2664_v48 = vmax.f32 %v2648_v32, %v2662_v45  ;;  %v2673_v33 = vadd.f32 %v2671_v31, %v2534_v18  ;;  %v2672_v49 = vadd.f32 %v2137_v47, %v2125_v30 }
 0x229   :  { %v2675_v50 = vadd.f32 %v3970_v14, %v2673_v33  ;;  %v2674_v38 = vadd.f32 %v2672_v49, %v2537_v42 }
 0x22b   :  { %v2677_v24 = vmax.f32 %v2675_v50, 0.0  ;;  %v2676_v35 = vadd.f32 %v3970_v14, %v2674_v38  ;;  %v2141_v57 = vpop.f32.mrb[24].mxu0 }
 0x22c   :  { %v2143_v51 = vpop.f32.mrb[25].mxu0 }
 0x22d   :  { %v2679_v34 = vmax.f32 %v2663_v44, %v2677_v24  ;;  %v2678_v52 = vmax.f32 %v2676_v35, 0.0  ;;  %v2687_v37 = vadd.f32 %v2143_v51, %v2131_v26  ;;  %v2145_v53 = vpop.f32.mrb[26].mxu0 }
 0x22e   :  { %v2147_v54 = vpop.f32.mrb[27].mxu0 }
 0x22f   :  { %v2680_v56 = vmax.f32 %v2664_v48, %v2678_v52  ;;  %v2689_v60 = vadd.f32 %v2687_v37, %v2542_v55  ;;  %v2688_v28 = vadd.f32 %v2147_v54, %v2135_v46 }
 0x231   :  { %v2691_v40 = vadd.f32 %v3970_v14, %v2689_v60  ;;  %v2690_v18 = vadd.f32 %v2688_v28, %v2545_v20 }
 0x233   :  { %v2693_v61 = vmax.f32 %v2691_v40, 0.0  ;;  %v2692_v43 = vadd.f32 %v3970_v14, %v2690_v18  ;;  %v2151_v42 = vpop.f32.mrb[40].mxu0 }
 0x234   :  { %v2153_v62 = vpop.f32.mrb[41].mxu0 }
 0x235   :  { %v2695_v63 = vmax.f32 %v2679_v34, %v2693_v61  ;;  %v2694_v0 = vmax.f32 %v2692_v43, 0.0  ;;  %v2155_v1 = vpop.f32.mrb[42].mxu0 }
 0x236   :  { %v2157_v8 = vpop.f32.mrb[43].mxu0 }
 0x237   :  { %2697 = vst [vmem:[#allocation8] sm:$0xff] %v2695_v63  ;;  %v2696_v2 = vmax.f32 %v2680_v56, %v2694_v0 }
 0x239   :  { %2698 = vst [vmem:[#allocation8 + $0x8] sm:$0xff] %v2696_v2 }
 0x23a   :  { %3634 = shalt.err (!%p3631_p6)
}
 0x23b   :  { %s3635_s17 = scalar_lea.hbm %s4003_s3, 256 }
 0x23c   :  { %p3636_p7 = scmp.ne.s32.totalorder %s4003_s3, %s3635_s17  ;;  %p3639_p8 = scmp.lt.u32.totalorder %s3635_s17, %s4003_s3 }
 0x23e   :  { %p3641_p9 = pnand %p3639_p8, %p3636_p7 }
 0x240   :  { %3644 = shalt.err (!%p3641_p9)
}
 0x241   :  { %s3658_s22 = smov 128   ;;  %s3659_s23 = smov 8  }
 0x242   :  { %2710 = dma.vmem_to_hbm [thread:$0]  %s2705_s13, 256, %s4003_s3, [#allocation5], %s3658_s22, %s3658_s22, %s3659_s23  }
 0x243   :  { %3649 = dma.done.wait [#allocation5], 256  }
 0x244   :  { %3650 = vsyncadd [#allocation5], 4294967040 }
 0x245   :  { %2714 = vsyncpa [#allocation4], 1 }
 0x246   :  { %2715 = vsyncpa [#allocation7], 1 }
 0x247   :  { %2716 = vsyncpa [#allocation5], 1 }

</bundles_post_ra>
